<compile_context>
chip_gen: v7x
topology: tpu7x:2x2x1
jax: 0.10.0
libtpu: 0.0.40
codegen_flags: <defaults>
</compile_context>

<pallas_src>
import functools

import jax
import jax.numpy as jnp
from jax.experimental import pallas as pl
from jax.experimental.pallas import tpu as pltpu


def _layernorm(x, gamma, beta, eps=1e-5):
    mu = jnp.mean(x, axis=-1, keepdims=True)
    var = jnp.mean((x - mu) ** 2, axis=-1, keepdims=True)
    return (x - mu) * jax.lax.rsqrt(var + eps) * gamma + beta


# -----------------------------------------------------------------------------
# Fused transformer-block kernel (one grid step = `bt` batch elements)
# -----------------------------------------------------------------------------
def _block_kernel(x_ref, ln1g_ref, ln1b_ref, wqkv_ref, wfc_ref, bfc_ref,
                  ln2g_ref, ln2b_ref, wgn_ref, bgn_ref, z_ref,
                  w1_ref, b1r_ref, w2_ref, b2e_ref, o_ref,
                  *, n_heads, top_k):
    Bt, T, C = x_ref.shape
    H = n_heads
    hs = C // H
    E = b2e_ref.shape[0]            # number of experts
    Hd = w1_ref.shape[1] // E       # expert hidden width
    N = Bt * T                      # tokens handled this grid step
    wdt = wqkv_ref.dtype            # matmul/weight compute dtype (bf16)

    x = x_ref[...].reshape(N, C)    # fold batch into the row/sublane dim (f32)

    # ------------------- stage 1: x = x + MHA(ln1(x)) -------------------------
    xn = _layernorm(x, ln1g_ref[0], ln1b_ref[0])
    # one lane-dense (N,C) @ (C,3C) projection for all heads' Q|K|V
    qkv = jnp.dot(xn.astype(wdt), wqkv_ref[...],
                  preferred_element_type=jnp.float32)            # (N, 3C) f32
    qkv3 = qkv.reshape(Bt, T, 3 * C)

    scale = C ** (-0.5)             # reference quirk: scale by n_embed
    rows = jax.lax.broadcasted_iota(jnp.int32, (T, T), 0)
    cols = jax.lax.broadcasted_iota(jnp.int32, (T, T), 1)
    causal = cols <= rows

    y = jnp.zeros((N, C), jnp.float32)
    for h in range(H):                                           # static unroll
        q = qkv3[:, :, h * hs:(h + 1) * hs]                      # (Bt, T, hs)
        k = qkv3[:, :, C + h * hs:C + (h + 1) * hs]
        v = qkv3[:, :, 2 * C + h * hs:2 * C + (h + 1) * hs]
        # batched score matmul, contracting hs directly (no explicit k.T)
        s = jnp.einsum('bqd,bkd->bqk', q, k,
                       preferred_element_type=jnp.float32) * scale
        s = jnp.where(causal[None], s, -jnp.inf)
        s = s - jnp.max(s, axis=-1, keepdims=True)
        p = jnp.exp(s)
        p = p * pl.reciprocal(jnp.sum(p, axis=-1, keepdims=True), approx=True)
        ho = jnp.einsum('bqk,bkd->bqd', p, v,
                        preferred_element_type=jnp.float32)      # (Bt, T, hs)
        # accumulate the output projection per head: no concat of 8-lane chunks
        y = y + jnp.dot(ho.reshape(N, hs).astype(wdt), wfc_ref[h],
                        preferred_element_type=jnp.float32)
    x1 = x + y + bfc_ref[0]                                      # residual (p=0)

    # ------------------- stage 2: x = x + MoE(ln2(x)) --------------------------
    xn2 = _layernorm(x1, ln2g_ref[0], ln2b_ref[0])

    # fused gate|noise projection: (N,C) @ (C,2E)
    gn = jnp.dot(xn2.astype(wdt), wgn_ref[...],
                 preferred_element_type=jnp.float32) + bgn_ref[0]
    gate = gn[:, :E]
    noise = gn[:, E:]
    # softplus(x) = max(x,0) + log1p(exp(-|x|))  (single exp / log1p)
    sp = jnp.maximum(noise, 0.0) + jnp.log1p(jnp.exp(-jnp.abs(noise)))
    hgate = gate + z_ref[...].reshape(N, E) * sp                 # (N, E)

    # top-k selection: pick & knock out the running max, k times (static unroll)
    colsE = jax.lax.broadcasted_iota(jnp.int32, (N, E), 1)
    cur = hgate
    keep = jnp.zeros((N, E), jnp.bool_)
    for _ in range(top_k):
        m = jnp.max(cur, axis=-1, keepdims=True)
        first = jnp.min(jnp.where(cur == m, colsE, E), axis=-1, keepdims=True)
        sel = colsE == first
        keep = jnp.logical_or(keep, sel)
        cur = jnp.where(sel, -jnp.inf, cur)

    g = jnp.where(keep, hgate, -jnp.inf)
    g = g - jnp.max(g, axis=-1, keepdims=True)
    pe = jnp.exp(g)
    scores = pe * pl.reciprocal(jnp.sum(pe, axis=-1, keepdims=True), approx=True)

    # grouped expert FFN; columns are Hd-major / E-minor: col j*E + e = (expert e, unit j)
    a = jnp.maximum(
        jnp.dot(xn2.astype(wdt), w1_ref[...],
                preferred_element_type=jnp.float32) + b1r_ref[0], 0.0)  # (N, Hd*E)
    # replicate scores across the Hd hidden units: lane-aligned concatenation
    scores_t = jnp.concatenate([scores] * Hd, axis=-1)                   # (N, Hd*E)
    yff = jnp.dot((a * scores_t).astype(wdt), w2_ref[...],
                  preferred_element_type=jnp.float32)                    # (N, C)
    yff = yff + jnp.dot(scores, b2e_ref[...],
                        preferred_element_type=jnp.float32)              # + sum_e score*b2_e

    o_ref[...] = (x1 + yff).reshape(Bt, T, C)                    # residual (p=0)


# -----------------------------------------------------------------------------
# Host-side wrapper
# -----------------------------------------------------------------------------
def _pick_batch_tile(B, T):
    """Fold batch elements into rows so matmul row tiles approach 128 sublanes,
    while keeping >=2 grid steps when possible (v7x: both TensorCores)."""
    bt = max(1, min(B, pl.cdiv(128, T)))
    while bt > 1 and (B // bt) < 2:
        bt -= 1
    while B % bt:
        bt -= 1
    return bt


def block_forward(x, noise_z, params, *, n_heads, top_k, batch_tile=None):
    B, T, C = x.shape
    p = params
    E = p["b2e"].shape[0]

    bt = batch_tile or _pick_batch_tile(B, T)
    assert B % bt == 0
    grid = (B // bt,)

    def _full(a):
        nd = a.ndim
        return pl.BlockSpec(a.shape, lambda b, _nd=nd: (0,) * _nd)

    x_spec = pl.BlockSpec((bt, T, C), lambda b: (b, 0, 0))
    z_spec = pl.BlockSpec((bt, T, E), lambda b: (b, 0, 0))

    kernel = functools.partial(_block_kernel, n_heads=n_heads, top_k=top_k)
    return pl.pallas_call(
        kernel,
        out_shape=jax.ShapeDtypeStruct((B, T, C), jnp.float32),
        grid=grid,
        in_specs=[
            x_spec,
            _full(p["ln1_g"]), _full(p["ln1_b"]),
            _full(p["wqkv"]), _full(p["wfc"]), _full(p["bfc"]),
            _full(p["ln2_g"]), _full(p["ln2_b"]),
            _full(p["wgn"]), _full(p["bgn"]),
            z_spec,
            _full(p["w1r"]), _full(p["b1r"]), _full(p["w2r"]), _full(p["b2e"]),
        ],
        out_specs=pl.BlockSpec((bt, T, C), lambda b: (b, 0, 0)),
        compiler_params=pltpu.CompilerParams(
            dimension_semantics=("parallel",)),
    )(x, p["ln1_g"], p["ln1_b"], p["wqkv"], p["wfc"], p["bfc"],
      p["ln2_g"], p["ln2_b"], p["wgn"], p["bgn"], noise_z,
      p["w1r"], p["b1r"], p["w2r"], p["b2e"])


def init_params(key, n_embed, n_heads, n_experts, top_k, weight_dtype=jnp.bfloat16):
    C = n_embed
    H = n_heads
    hs = C // H
    E = 4 * C        # MoE(n_embed, n_embed*4, n_experts, ...) -> n_experts = 4*n_embed
    Hd = n_experts   # ... and each Expert's hidden width = n_experts (quirk)

    keys = jax.random.split(key, 16)
    nrm = lambda k, shape: (0.02 * jax.random.normal(k, shape)).astype(jnp.float32)

    # attention: heads concatenated on the lane dim, Q|K|V fused -> (C, 3C)
    wq = nrm(keys[0], (C, C))
    wk = nrm(keys[1], (C, C))
    wv = nrm(keys[2], (C, C))
    wqkv = jnp.concatenate([wq, wk, wv], axis=1).astype(weight_dtype)
    wfc = nrm(keys[3], (C, C)).reshape(H, hs, C).astype(weight_dtype)  # per-head rows
    bfc = nrm(keys[4], (1, C))
    # gating: Wg | Wnoise fused -> (C, 2E)
    wg = nrm(keys[5], (C, E))
    wn = nrm(keys[6], (C, E))
    wgn = jnp.concatenate([wg, wn], axis=1).astype(weight_dtype)
    bg = nrm(keys[7], (1, E))
    bn = nrm(keys[8], (1, E))
    bgn = jnp.concatenate([bg, bn], axis=1)
    # experts, flattened into grouped-matmul form, Hd-major / E-minor columns
    w1 = nrm(keys[9], (E, C, Hd))
    b1 = nrm(keys[10], (E, Hd))
    w2 = nrm(keys[11], (E, Hd, C))
    b2e = nrm(keys[12], (E, C))
    w1r = jnp.transpose(w1, (1, 2, 0)).reshape(C, Hd * E).astype(weight_dtype)
    b1r = jnp.transpose(b1, (1, 0)).reshape(1, Hd * E)
    w2r = jnp.transpose(w2, (1, 0, 2)).reshape(Hd * E, C).astype(weight_dtype)
    # layer norms (PyTorch default init: weight=1, bias=0)
    ln1_g = jnp.ones((1, C), jnp.float32)
    ln1_b = jnp.zeros((1, C), jnp.float32)
    ln2_g = jnp.ones((1, C), jnp.float32)
    ln2_b = jnp.zeros((1, C), jnp.float32)

    params = dict(wqkv=wqkv, wfc=wfc, bfc=bfc,
                  wgn=wgn, bgn=bgn,
                  w1r=w1r, b1r=b1r, w2r=w2r, b2e=b2e,
                  ln1_g=ln1_g, ln1_b=ln1_b, ln2_g=ln2_g, ln2_b=ln2_b)
    return params, E


if __name__ == "__main__":
    # small-but-representative shapes implied by the module
    B, T = 2, 8
    n_embed, n_heads = 32, 4
    n_experts, top_k = 4, 2
    # block_size == T here; dropout = 0.0 (identity)

    key = jax.random.PRNGKey(0)
    k_x, k_p, k_z = jax.random.split(key, 3)

    params, E = init_params(k_p, n_embed, n_heads, n_experts, top_k)
    x = jax.random.normal(k_x, (B, T, n_embed), dtype=jnp.float32)
    # deterministic stand-in for torch.randn_like inside the noisy gating
    noise_z = jax.random.normal(k_z, (B, T, E), dtype=jnp.float32)

    fwd = jax.jit(functools.partial(block_forward, n_heads=n_heads, top_k=top_k))
    out = fwd(x, noise_z, params)
    jax.block_until_ready(out)

    assert out.shape == (B, T, n_embed) and out.dtype == jnp.float32
    assert bool(jnp.all(jnp.isfinite(out)))
    print("KERNEL_OK")
</pallas_src>

<mosaic_0001>
module attributes {stable_mosaic.version = 11 : i64} {
  func.func @_block_kernel(%arg0: i32, %arg1: memref<1x8x32xf32, #tpu.memory_space<vmem>>, %arg2: memref<1x32xf32, #tpu.memory_space<vmem>>, %arg3: memref<1x32xf32, #tpu.memory_space<vmem>>, %arg4: memref<32x96xbf16, #tpu.memory_space<vmem>>, %arg5: memref<4x8x32xbf16, #tpu.memory_space<vmem>>, %arg6: memref<1x32xf32, #tpu.memory_space<vmem>>, %arg7: memref<1x32xf32, #tpu.memory_space<vmem>>, %arg8: memref<1x32xf32, #tpu.memory_space<vmem>>, %arg9: memref<32x256xbf16, #tpu.memory_space<vmem>>, %arg10: memref<1x256xf32, #tpu.memory_space<vmem>>, %arg11: memref<1x8x128xf32, #tpu.memory_space<vmem>>, %arg12: memref<32x512xbf16, #tpu.memory_space<vmem>>, %arg13: memref<1x512xf32, #tpu.memory_space<vmem>>, %arg14: memref<512x32xbf16, #tpu.memory_space<vmem>>, %arg15: memref<128x32xf32, #tpu.memory_space<vmem>>, %arg16: memref<1x8x32xf32, #tpu.memory_space<vmem>>) attributes {dimension_semantics = [#tpu.dimension_semantics<parallel>], iteration_bounds = array<i64: 2>, scalar_prefetch = 0 : i64, scratch_operands = 0 : i64, tpu.core_type = #tpu.core_type<tc>, window_params = [{transform_indices = @transform_0, window_bounds = array<i64: 1, 8, 32>}, {pipeline_mode = #tpu.pipeline_mode<synchronous>, transform_indices = @transform_1, window_bounds = array<i64: 1, 32>}, {pipeline_mode = #tpu.pipeline_mode<synchronous>, transform_indices = @transform_2, window_bounds = array<i64: 1, 32>}, {pipeline_mode = #tpu.pipeline_mode<synchronous>, transform_indices = @transform_3, window_bounds = array<i64: 32, 96>}, {pipeline_mode = #tpu.pipeline_mode<synchronous>, transform_indices = @transform_4, window_bounds = array<i64: 4, 8, 32>}, {pipeline_mode = #tpu.pipeline_mode<synchronous>, transform_indices = @transform_5, window_bounds = array<i64: 1, 32>}, {pipeline_mode = #tpu.pipeline_mode<synchronous>, transform_indices = @transform_6, window_bounds = array<i64: 1, 32>}, {pipeline_mode = #tpu.pipeline_mode<synchronous>, transform_indices = @transform_7, window_bounds = array<i64: 1, 32>}, {pipeline_mode = #tpu.pipeline_mode<synchronous>, transform_indices = @transform_8, window_bounds = array<i64: 32, 256>}, {pipeline_mode = #tpu.pipeline_mode<synchronous>, transform_indices = @transform_9, window_bounds = array<i64: 1, 256>}, {transform_indices = @transform_10, window_bounds = array<i64: 1, 8, 128>}, {pipeline_mode = #tpu.pipeline_mode<synchronous>, transform_indices = @transform_11, window_bounds = array<i64: 32, 512>}, {pipeline_mode = #tpu.pipeline_mode<synchronous>, transform_indices = @transform_12, window_bounds = array<i64: 1, 512>}, {pipeline_mode = #tpu.pipeline_mode<synchronous>, transform_indices = @transform_13, window_bounds = array<i64: 512, 32>}, {pipeline_mode = #tpu.pipeline_mode<synchronous>, transform_indices = @transform_14, window_bounds = array<i64: 128, 32>}, {transform_indices = @transform_15, window_bounds = array<i64: 1, 8, 32>}]} {
    %c0 = arith.constant 0 : index
    %c0_0 = arith.constant 0 : index
    %c0_1 = arith.constant 0 : index
    %0 = vector.load %arg1[%c0, %c0_0, %c0_1] : memref<1x8x32xf32, #tpu.memory_space<vmem>>, vector<1x8x32xf32>
    %1 = vector.shape_cast %0 : vector<1x8x32xf32> to vector<8x32xf32>
    %c0_2 = arith.constant 0 : index
    %c0_3 = arith.constant 0 : index
    %2 = vector.load %arg2[%c0_2, %c0_3] : memref<1x32xf32, #tpu.memory_space<vmem>>, vector<1x32xf32>
    %3 = vector.shape_cast %2 : vector<1x32xf32> to vector<32xf32>
    %c0_4 = arith.constant 0 : index
    %c0_5 = arith.constant 0 : index
    %4 = vector.load %arg3[%c0_4, %c0_5] : memref<1x32xf32, #tpu.memory_space<vmem>>, vector<1x32xf32>
    %5 = vector.shape_cast %4 : vector<1x32xf32> to vector<32xf32>
    %cst = arith.constant dense<0.000000e+00> : vector<8xf32>
    %6 = vector.multi_reduction <add>, %1, %cst [1] : vector<8x32xf32> to vector<8xf32>
    %7 = vector.shape_cast %6 : vector<8xf32> to vector<8x1xf32>
    %cst_6 = arith.constant 3.200000e+01 : f32
    %8 = vector.broadcast %cst_6 : f32 to vector<8x1xf32>
    %9 = arith.divf %7, %8 : vector<8x1xf32>
    %10 = vector.broadcast %9 : vector<8x1xf32> to vector<8x32xf32>
    %11 = arith.subf %1, %10 : vector<8x32xf32>
    %12 = arith.mulf %11, %11 : vector<8x32xf32>
    %cst_7 = arith.constant dense<0.000000e+00> : vector<8xf32>
    %13 = vector.multi_reduction <add>, %12, %cst_7 [1] : vector<8x32xf32> to vector<8xf32>
    %14 = vector.shape_cast %13 : vector<8xf32> to vector<8x1xf32>
    %cst_8 = arith.constant 3.200000e+01 : f32
    %15 = vector.broadcast %cst_8 : f32 to vector<8x1xf32>
    %16 = arith.divf %14, %15 : vector<8x1xf32>
    %17 = vector.broadcast %9 : vector<8x1xf32> to vector<8x32xf32>
    %18 = arith.subf %1, %17 : vector<8x32xf32>
    %cst_9 = arith.constant 9.99999974E-6 : f32
    %19 = vector.broadcast %cst_9 : f32 to vector<8x1xf32>
    %20 = arith.addf %16, %19 : vector<8x1xf32>
    %21 = math.rsqrt %20 : vector<8x1xf32>
    %22 = vector.broadcast %21 : vector<8x1xf32> to vector<8x32xf32>
    %23 = arith.mulf %18, %22 : vector<8x32xf32>
    %24 = vector.shape_cast %3 : vector<32xf32> to vector<1x32xf32>
    %25 = vector.broadcast %24 : vector<1x32xf32> to vector<8x32xf32>
    %26 = arith.mulf %23, %25 : vector<8x32xf32>
    %27 = vector.shape_cast %5 : vector<32xf32> to vector<1x32xf32>
    %28 = vector.broadcast %27 : vector<1x32xf32> to vector<8x32xf32>
    %29 = arith.addf %26, %28 : vector<8x32xf32>
    %30 = arith.truncf %29 : vector<8x32xf32> to vector<8x32xbf16>
    %c0_10 = arith.constant 0 : index
    %c0_11 = arith.constant 0 : index
    %31 = vector.load %arg4[%c0_10, %c0_11] : memref<32x96xbf16, #tpu.memory_space<vmem>>, vector<32x96xbf16>
    %cst_12 = arith.constant dense<0.000000e+00> : vector<8x96xf32>
    %32 = tpu.matmul %30, %31, %cst_12 {dimension_numbers = #tpu.dot_dimension_numbers<[1], [0], [0], [1], [0, 0, 1, 1], [], []>} : vector<8x32xbf16>, vector<32x96xbf16>, vector<8x96xf32> -> vector<8x96xf32>
    %33 = vector.shape_cast %32 : vector<8x96xf32> to vector<1x8x96xf32>
    %34 = tpu.iota {dimensions = array<i32: 0>} : vector<8x8xi32>
    %35 = tpu.iota {dimensions = array<i32: 1>} : vector<8x8xi32>
    %36 = arith.cmpi sle, %35, %34 : vector<8x8xi32>
    %cst_13 = arith.constant 0.000000e+00 : f32
    %37 = vector.broadcast %cst_13 : f32 to vector<8x32xf32>
    %38 = vector.extract_strided_slice %33 {offsets = [0, 0, 0], sizes = [1, 8, 8], strides = [1, 1, 1]} : vector<1x8x96xf32> to vector<1x8x8xf32>
    %39 = vector.extract_strided_slice %33 {offsets = [0, 0, 32], sizes = [1, 8, 8], strides = [1, 1, 1]} : vector<1x8x96xf32> to vector<1x8x8xf32>
    %40 = vector.extract_strided_slice %33 {offsets = [0, 0, 64], sizes = [1, 8, 8], strides = [1, 1, 1]} : vector<1x8x96xf32> to vector<1x8x8xf32>
    "tpu.trace_start"() <{level = 10 : i32, message = "bqd,bkd->bqk"}> : () -> ()
    %cst_14 = arith.constant dense<0.000000e+00> : vector<1x8x8xf32>
    %41 = tpu.matmul %38, %39, %cst_14 {dimension_numbers = #tpu.dot_dimension_numbers<[2], [2], [1], [1], [0, 0, 0, 1, 1, 1], [0], [0]>} : vector<1x8x8xf32>, vector<1x8x8xf32>, vector<1x8x8xf32> -> vector<1x8x8xf32>
    "tpu.trace_stop"() : () -> ()
    %cst_15 = arith.constant 0.176776692 : f32
    %42 = vector.broadcast %cst_15 : f32 to vector<1x8x8xf32>
    %43 = arith.mulf %41, %42 : vector<1x8x8xf32>
    %44 = vector.shape_cast %36 : vector<8x8xi1> to vector<1x8x8xi1>
    %cst_16 = arith.constant 0xFF800000 : f32
    %45 = vector.broadcast %cst_16 : f32 to vector<1x8x8xf32>
    %46 = arith.select %44, %43, %45 : vector<1x8x8xi1>, vector<1x8x8xf32>
    %cst_17 = arith.constant dense<0xFF800000> : vector<1x8xf32>
    %47 = vector.multi_reduction <maximumf>, %46, %cst_17 [2] : vector<1x8x8xf32> to vector<1x8xf32>
    %48 = vector.shape_cast %47 : vector<1x8xf32> to vector<1x8x1xf32>
    %49 = vector.broadcast %48 : vector<1x8x1xf32> to vector<1x8x8xf32>
    %50 = arith.subf %46, %49 : vector<1x8x8xf32>
    %51 = math.exp %50 : vector<1x8x8xf32>
    %cst_18 = arith.constant dense<0.000000e+00> : vector<1x8xf32>
    %52 = vector.multi_reduction <add>, %51, %cst_18 [2] : vector<1x8x8xf32> to vector<1x8xf32>
    %53 = vector.shape_cast %52 : vector<1x8xf32> to vector<1x8x1xf32>
    %54 = tpu.reciprocal %53 {approx = true} : vector<1x8x1xf32> -> vector<1x8x1xf32>
    %55 = vector.broadcast %54 : vector<1x8x1xf32> to vector<1x8x8xf32>
    %56 = arith.mulf %51, %55 : vector<1x8x8xf32>
    "tpu.trace_start"() <{level = 10 : i32, message = "bqk,bkd->bqd"}> : () -> ()
    %cst_19 = arith.constant dense<0.000000e+00> : vector<1x8x8xf32>
    %57 = tpu.matmul %56, %40, %cst_19 {dimension_numbers = #tpu.dot_dimension_numbers<[2], [1], [1], [2], [0, 0, 0, 1, 1, 2], [0], [0]>} : vector<1x8x8xf32>, vector<1x8x8xf32>, vector<1x8x8xf32> -> vector<1x8x8xf32>
    "tpu.trace_stop"() : () -> ()
    %58 = vector.shape_cast %57 : vector<1x8x8xf32> to vector<8x8xf32>
    %59 = arith.truncf %58 : vector<8x8xf32> to vector<8x8xbf16>
    %c0_20 = arith.constant 0 : index
    %c0_21 = arith.constant 0 : index
    %c0_22 = arith.constant 0 : index
    %60 = vector.load %arg5[%c0_20, %c0_21, %c0_22] : memref<4x8x32xbf16, #tpu.memory_space<vmem>>, vector<1x8x32xbf16>
    %61 = vector.shape_cast %60 : vector<1x8x32xbf16> to vector<8x32xbf16>
    %cst_23 = arith.constant dense<0.000000e+00> : vector<8x32xf32>
    %62 = tpu.matmul %59, %61, %cst_23 {dimension_numbers = #tpu.dot_dimension_numbers<[1], [0], [0], [1], [0, 0, 1, 1], [], []>} : vector<8x8xbf16>, vector<8x32xbf16>, vector<8x32xf32> -> vector<8x32xf32>
    %63 = arith.addf %37, %62 : vector<8x32xf32>
    %64 = vector.extract_strided_slice %33 {offsets = [0, 0, 8], sizes = [1, 8, 8], strides = [1, 1, 1]} : vector<1x8x96xf32> to vector<1x8x8xf32>
    %65 = vector.extract_strided_slice %33 {offsets = [0, 0, 40], sizes = [1, 8, 8], strides = [1, 1, 1]} : vector<1x8x96xf32> to vector<1x8x8xf32>
    %66 = vector.extract_strided_slice %33 {offsets = [0, 0, 72], sizes = [1, 8, 8], strides = [1, 1, 1]} : vector<1x8x96xf32> to vector<1x8x8xf32>
    "tpu.trace_start"() <{level = 10 : i32, message = "bqd,bkd->bqk"}> : () -> ()
    %cst_24 = arith.constant dense<0.000000e+00> : vector<1x8x8xf32>
    %67 = tpu.matmul %64, %65, %cst_24 {dimension_numbers = #tpu.dot_dimension_numbers<[2], [2], [1], [1], [0, 0, 0, 1, 1, 1], [0], [0]>} : vector<1x8x8xf32>, vector<1x8x8xf32>, vector<1x8x8xf32> -> vector<1x8x8xf32>
    "tpu.trace_stop"() : () -> ()
    %cst_25 = arith.constant 0.176776692 : f32
    %68 = vector.broadcast %cst_25 : f32 to vector<1x8x8xf32>
    %69 = arith.mulf %67, %68 : vector<1x8x8xf32>
    %70 = vector.shape_cast %36 : vector<8x8xi1> to vector<1x8x8xi1>
    %cst_26 = arith.constant 0xFF800000 : f32
    %71 = vector.broadcast %cst_26 : f32 to vector<1x8x8xf32>
    %72 = arith.select %70, %69, %71 : vector<1x8x8xi1>, vector<1x8x8xf32>
    %cst_27 = arith.constant dense<0xFF800000> : vector<1x8xf32>
    %73 = vector.multi_reduction <maximumf>, %72, %cst_27 [2] : vector<1x8x8xf32> to vector<1x8xf32>
    %74 = vector.shape_cast %73 : vector<1x8xf32> to vector<1x8x1xf32>
    %75 = vector.broadcast %74 : vector<1x8x1xf32> to vector<1x8x8xf32>
    %76 = arith.subf %72, %75 : vector<1x8x8xf32>
    %77 = math.exp %76 : vector<1x8x8xf32>
    %cst_28 = arith.constant dense<0.000000e+00> : vector<1x8xf32>
    %78 = vector.multi_reduction <add>, %77, %cst_28 [2] : vector<1x8x8xf32> to vector<1x8xf32>
    %79 = vector.shape_cast %78 : vector<1x8xf32> to vector<1x8x1xf32>
    %80 = tpu.reciprocal %79 {approx = true} : vector<1x8x1xf32> -> vector<1x8x1xf32>
    %81 = vector.broadcast %80 : vector<1x8x1xf32> to vector<1x8x8xf32>
    %82 = arith.mulf %77, %81 : vector<1x8x8xf32>
    "tpu.trace_start"() <{level = 10 : i32, message = "bqk,bkd->bqd"}> : () -> ()
    %cst_29 = arith.constant dense<0.000000e+00> : vector<1x8x8xf32>
    %83 = tpu.matmul %82, %66, %cst_29 {dimension_numbers = #tpu.dot_dimension_numbers<[2], [1], [1], [2], [0, 0, 0, 1, 1, 2], [0], [0]>} : vector<1x8x8xf32>, vector<1x8x8xf32>, vector<1x8x8xf32> -> vector<1x8x8xf32>
    "tpu.trace_stop"() : () -> ()
    %84 = vector.shape_cast %83 : vector<1x8x8xf32> to vector<8x8xf32>
    %85 = arith.truncf %84 : vector<8x8xf32> to vector<8x8xbf16>
    %c1 = arith.constant 1 : index
    %c0_30 = arith.constant 0 : index
    %c0_31 = arith.constant 0 : index
    %86 = vector.load %arg5[%c1, %c0_30, %c0_31] : memref<4x8x32xbf16, #tpu.memory_space<vmem>>, vector<1x8x32xbf16>
    %87 = vector.shape_cast %86 : vector<1x8x32xbf16> to vector<8x32xbf16>
    %cst_32 = arith.constant dense<0.000000e+00> : vector<8x32xf32>
    %88 = tpu.matmul %85, %87, %cst_32 {dimension_numbers = #tpu.dot_dimension_numbers<[1], [0], [0], [1], [0, 0, 1, 1], [], []>} : vector<8x8xbf16>, vector<8x32xbf16>, vector<8x32xf32> -> vector<8x32xf32>
    %89 = arith.addf %63, %88 : vector<8x32xf32>
    %90 = vector.extract_strided_slice %33 {offsets = [0, 0, 16], sizes = [1, 8, 8], strides = [1, 1, 1]} : vector<1x8x96xf32> to vector<1x8x8xf32>
    %91 = vector.extract_strided_slice %33 {offsets = [0, 0, 48], sizes = [1, 8, 8], strides = [1, 1, 1]} : vector<1x8x96xf32> to vector<1x8x8xf32>
    %92 = vector.extract_strided_slice %33 {offsets = [0, 0, 80], sizes = [1, 8, 8], strides = [1, 1, 1]} : vector<1x8x96xf32> to vector<1x8x8xf32>
    "tpu.trace_start"() <{level = 10 : i32, message = "bqd,bkd->bqk"}> : () -> ()
    %cst_33 = arith.constant dense<0.000000e+00> : vector<1x8x8xf32>
    %93 = tpu.matmul %90, %91, %cst_33 {dimension_numbers = #tpu.dot_dimension_numbers<[2], [2], [1], [1], [0, 0, 0, 1, 1, 1], [0], [0]>} : vector<1x8x8xf32>, vector<1x8x8xf32>, vector<1x8x8xf32> -> vector<1x8x8xf32>
    "tpu.trace_stop"() : () -> ()
    %cst_34 = arith.constant 0.176776692 : f32
    %94 = vector.broadcast %cst_34 : f32 to vector<1x8x8xf32>
    %95 = arith.mulf %93, %94 : vector<1x8x8xf32>
    %96 = vector.shape_cast %36 : vector<8x8xi1> to vector<1x8x8xi1>
    %cst_35 = arith.constant 0xFF800000 : f32
    %97 = vector.broadcast %cst_35 : f32 to vector<1x8x8xf32>
    %98 = arith.select %96, %95, %97 : vector<1x8x8xi1>, vector<1x8x8xf32>
    %cst_36 = arith.constant dense<0xFF800000> : vector<1x8xf32>
    %99 = vector.multi_reduction <maximumf>, %98, %cst_36 [2] : vector<1x8x8xf32> to vector<1x8xf32>
    %100 = vector.shape_cast %99 : vector<1x8xf32> to vector<1x8x1xf32>
    %101 = vector.broadcast %100 : vector<1x8x1xf32> to vector<1x8x8xf32>
    %102 = arith.subf %98, %101 : vector<1x8x8xf32>
    %103 = math.exp %102 : vector<1x8x8xf32>
    %cst_37 = arith.constant dense<0.000000e+00> : vector<1x8xf32>
    %104 = vector.multi_reduction <add>, %103, %cst_37 [2] : vector<1x8x8xf32> to vector<1x8xf32>
    %105 = vector.shape_cast %104 : vector<1x8xf32> to vector<1x8x1xf32>
    %106 = tpu.reciprocal %105 {approx = true} : vector<1x8x1xf32> -> vector<1x8x1xf32>
    %107 = vector.broadcast %106 : vector<1x8x1xf32> to vector<1x8x8xf32>
    %108 = arith.mulf %103, %107 : vector<1x8x8xf32>
    "tpu.trace_start"() <{level = 10 : i32, message = "bqk,bkd->bqd"}> : () -> ()
    %cst_38 = arith.constant dense<0.000000e+00> : vector<1x8x8xf32>
    %109 = tpu.matmul %108, %92, %cst_38 {dimension_numbers = #tpu.dot_dimension_numbers<[2], [1], [1], [2], [0, 0, 0, 1, 1, 2], [0], [0]>} : vector<1x8x8xf32>, vector<1x8x8xf32>, vector<1x8x8xf32> -> vector<1x8x8xf32>
    "tpu.trace_stop"() : () -> ()
    %110 = vector.shape_cast %109 : vector<1x8x8xf32> to vector<8x8xf32>
    %111 = arith.truncf %110 : vector<8x8xf32> to vector<8x8xbf16>
    %c2 = arith.constant 2 : index
    %c0_39 = arith.constant 0 : index
    %c0_40 = arith.constant 0 : index
    %112 = vector.load %arg5[%c2, %c0_39, %c0_40] : memref<4x8x32xbf16, #tpu.memory_space<vmem>>, vector<1x8x32xbf16>
    %113 = vector.shape_cast %112 : vector<1x8x32xbf16> to vector<8x32xbf16>
    %cst_41 = arith.constant dense<0.000000e+00> : vector<8x32xf32>
    %114 = tpu.matmul %111, %113, %cst_41 {dimension_numbers = #tpu.dot_dimension_numbers<[1], [0], [0], [1], [0, 0, 1, 1], [], []>} : vector<8x8xbf16>, vector<8x32xbf16>, vector<8x32xf32> -> vector<8x32xf32>
    %115 = arith.addf %89, %114 : vector<8x32xf32>
    %116 = vector.extract_strided_slice %33 {offsets = [0, 0, 24], sizes = [1, 8, 8], strides = [1, 1, 1]} : vector<1x8x96xf32> to vector<1x8x8xf32>
    %117 = vector.extract_strided_slice %33 {offsets = [0, 0, 56], sizes = [1, 8, 8], strides = [1, 1, 1]} : vector<1x8x96xf32> to vector<1x8x8xf32>
    %118 = vector.extract_strided_slice %33 {offsets = [0, 0, 88], sizes = [1, 8, 8], strides = [1, 1, 1]} : vector<1x8x96xf32> to vector<1x8x8xf32>
    "tpu.trace_start"() <{level = 10 : i32, message = "bqd,bkd->bqk"}> : () -> ()
    %cst_42 = arith.constant dense<0.000000e+00> : vector<1x8x8xf32>
    %119 = tpu.matmul %116, %117, %cst_42 {dimension_numbers = #tpu.dot_dimension_numbers<[2], [2], [1], [1], [0, 0, 0, 1, 1, 1], [0], [0]>} : vector<1x8x8xf32>, vector<1x8x8xf32>, vector<1x8x8xf32> -> vector<1x8x8xf32>
    "tpu.trace_stop"() : () -> ()
    %cst_43 = arith.constant 0.176776692 : f32
    %120 = vector.broadcast %cst_43 : f32 to vector<1x8x8xf32>
    %121 = arith.mulf %119, %120 : vector<1x8x8xf32>
    %122 = vector.shape_cast %36 : vector<8x8xi1> to vector<1x8x8xi1>
    %cst_44 = arith.constant 0xFF800000 : f32
    %123 = vector.broadcast %cst_44 : f32 to vector<1x8x8xf32>
    %124 = arith.select %122, %121, %123 : vector<1x8x8xi1>, vector<1x8x8xf32>
    %cst_45 = arith.constant dense<0xFF800000> : vector<1x8xf32>
    %125 = vector.multi_reduction <maximumf>, %124, %cst_45 [2] : vector<1x8x8xf32> to vector<1x8xf32>
    %126 = vector.shape_cast %125 : vector<1x8xf32> to vector<1x8x1xf32>
    %127 = vector.broadcast %126 : vector<1x8x1xf32> to vector<1x8x8xf32>
    %128 = arith.subf %124, %127 : vector<1x8x8xf32>
    %129 = math.exp %128 : vector<1x8x8xf32>
    %cst_46 = arith.constant dense<0.000000e+00> : vector<1x8xf32>
    %130 = vector.multi_reduction <add>, %129, %cst_46 [2] : vector<1x8x8xf32> to vector<1x8xf32>
    %131 = vector.shape_cast %130 : vector<1x8xf32> to vector<1x8x1xf32>
    %132 = tpu.reciprocal %131 {approx = true} : vector<1x8x1xf32> -> vector<1x8x1xf32>
    %133 = vector.broadcast %132 : vector<1x8x1xf32> to vector<1x8x8xf32>
    %134 = arith.mulf %129, %133 : vector<1x8x8xf32>
    "tpu.trace_start"() <{level = 10 : i32, message = "bqk,bkd->bqd"}> : () -> ()
    %cst_47 = arith.constant dense<0.000000e+00> : vector<1x8x8xf32>
    %135 = tpu.matmul %134, %118, %cst_47 {dimension_numbers = #tpu.dot_dimension_numbers<[2], [1], [1], [2], [0, 0, 0, 1, 1, 2], [0], [0]>} : vector<1x8x8xf32>, vector<1x8x8xf32>, vector<1x8x8xf32> -> vector<1x8x8xf32>
    "tpu.trace_stop"() : () -> ()
    %136 = vector.shape_cast %135 : vector<1x8x8xf32> to vector<8x8xf32>
    %137 = arith.truncf %136 : vector<8x8xf32> to vector<8x8xbf16>
    %c3 = arith.constant 3 : index
    %c0_48 = arith.constant 0 : index
    %c0_49 = arith.constant 0 : index
    %138 = vector.load %arg5[%c3, %c0_48, %c0_49] : memref<4x8x32xbf16, #tpu.memory_space<vmem>>, vector<1x8x32xbf16>
    %139 = vector.shape_cast %138 : vector<1x8x32xbf16> to vector<8x32xbf16>
    %cst_50 = arith.constant dense<0.000000e+00> : vector<8x32xf32>
    %140 = tpu.matmul %137, %139, %cst_50 {dimension_numbers = #tpu.dot_dimension_numbers<[1], [0], [0], [1], [0, 0, 1, 1], [], []>} : vector<8x8xbf16>, vector<8x32xbf16>, vector<8x32xf32> -> vector<8x32xf32>
    %141 = arith.addf %115, %140 : vector<8x32xf32>
    %142 = arith.addf %1, %141 : vector<8x32xf32>
    %c0_51 = arith.constant 0 : index
    %c0_52 = arith.constant 0 : index
    %143 = vector.load %arg6[%c0_51, %c0_52] : memref<1x32xf32, #tpu.memory_space<vmem>>, vector<1x32xf32>
    %144 = vector.shape_cast %143 : vector<1x32xf32> to vector<32xf32>
    %145 = vector.shape_cast %144 : vector<32xf32> to vector<1x32xf32>
    %146 = vector.broadcast %145 : vector<1x32xf32> to vector<8x32xf32>
    %147 = arith.addf %142, %146 : vector<8x32xf32>
    %c0_53 = arith.constant 0 : index
    %c0_54 = arith.constant 0 : index
    %148 = vector.load %arg7[%c0_53, %c0_54] : memref<1x32xf32, #tpu.memory_space<vmem>>, vector<1x32xf32>
    %149 = vector.shape_cast %148 : vector<1x32xf32> to vector<32xf32>
    %c0_55 = arith.constant 0 : index
    %c0_56 = arith.constant 0 : index
    %150 = vector.load %arg8[%c0_55, %c0_56] : memref<1x32xf32, #tpu.memory_space<vmem>>, vector<1x32xf32>
    %151 = vector.shape_cast %150 : vector<1x32xf32> to vector<32xf32>
    %cst_57 = arith.constant dense<0.000000e+00> : vector<8xf32>
    %152 = vector.multi_reduction <add>, %147, %cst_57 [1] : vector<8x32xf32> to vector<8xf32>
    %153 = vector.shape_cast %152 : vector<8xf32> to vector<8x1xf32>
    %cst_58 = arith.constant 3.200000e+01 : f32
    %154 = vector.broadcast %cst_58 : f32 to vector<8x1xf32>
    %155 = arith.divf %153, %154 : vector<8x1xf32>
    %156 = vector.broadcast %155 : vector<8x1xf32> to vector<8x32xf32>
    %157 = arith.subf %147, %156 : vector<8x32xf32>
    %158 = arith.mulf %157, %157 : vector<8x32xf32>
    %cst_59 = arith.constant dense<0.000000e+00> : vector<8xf32>
    %159 = vector.multi_reduction <add>, %158, %cst_59 [1] : vector<8x32xf32> to vector<8xf32>
    %160 = vector.shape_cast %159 : vector<8xf32> to vector<8x1xf32>
    %cst_60 = arith.constant 3.200000e+01 : f32
    %161 = vector.broadcast %cst_60 : f32 to vector<8x1xf32>
    %162 = arith.divf %160, %161 : vector<8x1xf32>
    %163 = vector.broadcast %155 : vector<8x1xf32> to vector<8x32xf32>
    %164 = arith.subf %147, %163 : vector<8x32xf32>
    %cst_61 = arith.constant 9.99999974E-6 : f32
    %165 = vector.broadcast %cst_61 : f32 to vector<8x1xf32>
    %166 = arith.addf %162, %165 : vector<8x1xf32>
    %167 = math.rsqrt %166 : vector<8x1xf32>
    %168 = vector.broadcast %167 : vector<8x1xf32> to vector<8x32xf32>
    %169 = arith.mulf %164, %168 : vector<8x32xf32>
    %170 = vector.shape_cast %149 : vector<32xf32> to vector<1x32xf32>
    %171 = vector.broadcast %170 : vector<1x32xf32> to vector<8x32xf32>
    %172 = arith.mulf %169, %171 : vector<8x32xf32>
    %173 = vector.shape_cast %151 : vector<32xf32> to vector<1x32xf32>
    %174 = vector.broadcast %173 : vector<1x32xf32> to vector<8x32xf32>
    %175 = arith.addf %172, %174 : vector<8x32xf32>
    %176 = arith.truncf %175 : vector<8x32xf32> to vector<8x32xbf16>
    %c0_62 = arith.constant 0 : index
    %c0_63 = arith.constant 0 : index
    %177 = vector.load %arg9[%c0_62, %c0_63] : memref<32x256xbf16, #tpu.memory_space<vmem>>, vector<32x256xbf16>
    %cst_64 = arith.constant dense<0.000000e+00> : vector<8x256xf32>
    %178 = tpu.matmul %176, %177, %cst_64 {dimension_numbers = #tpu.dot_dimension_numbers<[1], [0], [0], [1], [0, 0, 1, 1], [], []>} : vector<8x32xbf16>, vector<32x256xbf16>, vector<8x256xf32> -> vector<8x256xf32>
    %c0_65 = arith.constant 0 : index
    %c0_66 = arith.constant 0 : index
    %179 = vector.load %arg10[%c0_65, %c0_66] : memref<1x256xf32, #tpu.memory_space<vmem>>, vector<1x256xf32>
    %180 = vector.shape_cast %179 : vector<1x256xf32> to vector<256xf32>
    %181 = vector.shape_cast %180 : vector<256xf32> to vector<1x256xf32>
    %182 = vector.broadcast %181 : vector<1x256xf32> to vector<8x256xf32>
    %183 = arith.addf %178, %182 : vector<8x256xf32>
    %184 = vector.extract_strided_slice %183 {offsets = [0, 0], sizes = [8, 128], strides = [1, 1]} : vector<8x256xf32> to vector<8x128xf32>
    %185 = vector.extract_strided_slice %183 {offsets = [0, 128], sizes = [8, 128], strides = [1, 1]} : vector<8x256xf32> to vector<8x128xf32>
    %cst_67 = arith.constant 0.000000e+00 : f32
    %186 = vector.broadcast %cst_67 : f32 to vector<8x128xf32>
    %187 = arith.maximumf %185, %186 : vector<8x128xf32>
    %188 = math.absf %185 : vector<8x128xf32>
    %cst_68 = arith.constant 0.000000e+00 : f32
    %189 = vector.broadcast %cst_68 : f32 to vector<8x128xf32>
    %190 = arith.subf %189, %188 : vector<8x128xf32>
    %191 = math.exp %190 : vector<8x128xf32>
    %192 = math.log1p %191 : vector<8x128xf32>
    %193 = arith.addf %187, %192 : vector<8x128xf32>
    %c0_69 = arith.constant 0 : index
    %c0_70 = arith.constant 0 : index
    %c0_71 = arith.constant 0 : index
    %194 = vector.load %arg11[%c0_69, %c0_70, %c0_71] : memref<1x8x128xf32, #tpu.memory_space<vmem>>, vector<1x8x128xf32>
    %195 = vector.shape_cast %194 : vector<1x8x128xf32> to vector<8x128xf32>
    %196 = arith.mulf %195, %193 : vector<8x128xf32>
    %197 = arith.addf %184, %196 : vector<8x128xf32>
    %198 = tpu.iota {dimensions = array<i32: 1>} : vector<8x128xi32>
    %false = arith.constant false
    %199 = vector.broadcast %false : i1 to vector<8x128xi1>
    %cst_72 = arith.constant dense<0xFF800000> : vector<8xf32>
    %200 = vector.multi_reduction <maximumf>, %197, %cst_72 [1] : vector<8x128xf32> to vector<8xf32>
    %201 = vector.shape_cast %200 : vector<8xf32> to vector<8x1xf32>
    %202 = vector.broadcast %201 : vector<8x1xf32> to vector<8x128xf32>
    %203 = arith.cmpf oeq, %197, %202 : vector<8x128xf32>
    %c128_i32 = arith.constant 128 : i32
    %204 = vector.broadcast %c128_i32 : i32 to vector<8x128xi32>
    %205 = arith.select %203, %198, %204 : vector<8x128xi1>, vector<8x128xi32>
    %cst_73 = arith.constant dense<2147483647> : vector<8xi32>
    %206 = vector.multi_reduction <minsi>, %205, %cst_73 [1] : vector<8x128xi32> to vector<8xi32>
    %207 = vector.shape_cast %206 : vector<8xi32> to vector<8x1xi32>
    %208 = vector.broadcast %207 : vector<8x1xi32> to vector<8x128xi32>
    %209 = arith.cmpi eq, %198, %208 : vector<8x128xi32>
    %210 = arith.ori %199, %209 : vector<8x128xi1>
    %cst_74 = arith.constant 0xFF800000 : f32
    %211 = vector.broadcast %cst_74 : f32 to vector<8x128xf32>
    %212 = arith.select %209, %211, %197 : vector<8x128xi1>, vector<8x128xf32>
    %cst_75 = arith.constant dense<0xFF800000> : vector<8xf32>
    %213 = vector.multi_reduction <maximumf>, %212, %cst_75 [1] : vector<8x128xf32> to vector<8xf32>
    %214 = vector.shape_cast %213 : vector<8xf32> to vector<8x1xf32>
    %215 = vector.broadcast %214 : vector<8x1xf32> to vector<8x128xf32>
    %216 = arith.cmpf oeq, %212, %215 : vector<8x128xf32>
    %c128_i32_76 = arith.constant 128 : i32
    %217 = vector.broadcast %c128_i32_76 : i32 to vector<8x128xi32>
    %218 = arith.select %216, %198, %217 : vector<8x128xi1>, vector<8x128xi32>
    %cst_77 = arith.constant dense<2147483647> : vector<8xi32>
    %219 = vector.multi_reduction <minsi>, %218, %cst_77 [1] : vector<8x128xi32> to vector<8xi32>
    %220 = vector.shape_cast %219 : vector<8xi32> to vector<8x1xi32>
    %221 = vector.broadcast %220 : vector<8x1xi32> to vector<8x128xi32>
    %222 = arith.cmpi eq, %198, %221 : vector<8x128xi32>
    %223 = arith.ori %210, %222 : vector<8x128xi1>
    %cst_78 = arith.constant 0xFF800000 : f32
    %224 = vector.broadcast %cst_78 : f32 to vector<8x128xf32>
    %225 = arith.select %223, %197, %224 : vector<8x128xi1>, vector<8x128xf32>
    %cst_79 = arith.constant dense<0xFF800000> : vector<8xf32>
    %226 = vector.multi_reduction <maximumf>, %225, %cst_79 [1] : vector<8x128xf32> to vector<8xf32>
    %227 = vector.shape_cast %226 : vector<8xf32> to vector<8x1xf32>
    %228 = vector.broadcast %227 : vector<8x1xf32> to vector<8x128xf32>
    %229 = arith.subf %225, %228 : vector<8x128xf32>
    %230 = math.exp %229 : vector<8x128xf32>
    %cst_80 = arith.constant dense<0.000000e+00> : vector<8xf32>
    %231 = vector.multi_reduction <add>, %230, %cst_80 [1] : vector<8x128xf32> to vector<8xf32>
    %232 = vector.shape_cast %231 : vector<8xf32> to vector<8x1xf32>
    %233 = tpu.reciprocal %232 {approx = true} : vector<8x1xf32> -> vector<8x1xf32>
    %234 = vector.broadcast %233 : vector<8x1xf32> to vector<8x128xf32>
    %235 = arith.mulf %230, %234 : vector<8x128xf32>
    %236 = arith.truncf %175 : vector<8x32xf32> to vector<8x32xbf16>
    %c0_81 = arith.constant 0 : index
    %c0_82 = arith.constant 0 : index
    %237 = vector.load %arg12[%c0_81, %c0_82] : memref<32x512xbf16, #tpu.memory_space<vmem>>, vector<32x512xbf16>
    %cst_83 = arith.constant dense<0.000000e+00> : vector<8x512xf32>
    %238 = tpu.matmul %236, %237, %cst_83 {dimension_numbers = #tpu.dot_dimension_numbers<[1], [0], [0], [1], [0, 0, 1, 1], [], []>} : vector<8x32xbf16>, vector<32x512xbf16>, vector<8x512xf32> -> vector<8x512xf32>
    %c0_84 = arith.constant 0 : index
    %c0_85 = arith.constant 0 : index
    %239 = vector.load %arg13[%c0_84, %c0_85] : memref<1x512xf32, #tpu.memory_space<vmem>>, vector<1x512xf32>
    %240 = vector.shape_cast %239 : vector<1x512xf32> to vector<512xf32>
    %241 = vector.shape_cast %240 : vector<512xf32> to vector<1x512xf32>
    %242 = vector.broadcast %241 : vector<1x512xf32> to vector<8x512xf32>
    %243 = arith.addf %238, %242 : vector<8x512xf32>
    %cst_86 = arith.constant 0.000000e+00 : f32
    %244 = vector.broadcast %cst_86 : f32 to vector<8x512xf32>
    %245 = arith.maximumf %243, %244 : vector<8x512xf32>
    %246 = tpu.concatenate %235, %235, %235, %235 in 1 : vector<8x128xf32>, vector<8x128xf32>, vector<8x128xf32>, vector<8x128xf32> -> vector<8x512xf32>
    %247 = arith.mulf %245, %246 : vector<8x512xf32>
    %248 = arith.truncf %247 : vector<8x512xf32> to vector<8x512xbf16>
    %c0_87 = arith.constant 0 : index
    %c0_88 = arith.constant 0 : index
    %249 = vector.load %arg14[%c0_87, %c0_88] : memref<512x32xbf16, #tpu.memory_space<vmem>>, vector<512x32xbf16>
    %cst_89 = arith.constant dense<0.000000e+00> : vector<8x32xf32>
    %250 = tpu.matmul %248, %249, %cst_89 {dimension_numbers = #tpu.dot_dimension_numbers<[1], [0], [0], [1], [0, 0, 1, 1], [], []>} : vector<8x512xbf16>, vector<512x32xbf16>, vector<8x32xf32> -> vector<8x32xf32>
    %c0_90 = arith.constant 0 : index
    %c0_91 = arith.constant 0 : index
    %251 = vector.load %arg15[%c0_90, %c0_91] : memref<128x32xf32, #tpu.memory_space<vmem>>, vector<128x32xf32>
    %cst_92 = arith.constant dense<0.000000e+00> : vector<8x32xf32>
    %252 = tpu.matmul %235, %251, %cst_92 {dimension_numbers = #tpu.dot_dimension_numbers<[1], [0], [0], [1], [0, 0, 1, 1], [], []>} : vector<8x128xf32>, vector<128x32xf32>, vector<8x32xf32> -> vector<8x32xf32>
    %253 = arith.addf %250, %252 : vector<8x32xf32>
    %254 = arith.addf %147, %253 : vector<8x32xf32>
    %255 = vector.shape_cast %254 : vector<8x32xf32> to vector<1x8x32xf32>
    %c0_93 = arith.constant 0 : index
    %c0_94 = arith.constant 0 : index
    %c0_95 = arith.constant 0 : index
    %256 = vector.load %arg16[%c0_93, %c0_94, %c0_95] : memref<1x8x32xf32, #tpu.memory_space<vmem>>, vector<1x8x32xf32>
    tpu.vector_store %arg16[%c0_93, %c0_94, %c0_95], %255 {strides = array<i32>} : memref<1x8x32xf32, #tpu.memory_space<vmem>>, vector<1x8x32xf32>,
    return
  }
  func.func @transform_0(%arg0: i32) -> (i32, i32, i32) {
    %c0_i32 = arith.constant 0 : i32
    %c0_i32_0 = arith.constant 0 : i32
    %c0_i32_1 = arith.constant 0 : i32
    return %arg0, %c0_i32, %c0_i32_0 : i32, i32, i32
  }
  func.func @transform_1(%arg0: i32) -> (i32, i32) {
    %c0_i32 = arith.constant 0 : i32
    %c0_i32_0 = arith.constant 0 : i32
    %c0_i32_1 = arith.constant 0 : i32
    return %c0_i32, %c0_i32_0 : i32, i32
  }
  func.func @transform_2(%arg0: i32) -> (i32, i32) {
    %c0_i32 = arith.constant 0 : i32
    %c0_i32_0 = arith.constant 0 : i32
    %c0_i32_1 = arith.constant 0 : i32
    return %c0_i32, %c0_i32_0 : i32, i32
  }
  func.func @transform_3(%arg0: i32) -> (i32, i32) {
    %c0_i32 = arith.constant 0 : i32
    %c0_i32_0 = arith.constant 0 : i32
    %c0_i32_1 = arith.constant 0 : i32
    return %c0_i32, %c0_i32_0 : i32, i32
  }
  func.func @transform_4(%arg0: i32) -> (i32, i32, i32) {
    %c0_i32 = arith.constant 0 : i32
    %c0_i32_0 = arith.constant 0 : i32
    %c0_i32_1 = arith.constant 0 : i32
    %c0_i32_2 = arith.constant 0 : i32
    return %c0_i32, %c0_i32_0, %c0_i32_1 : i32, i32, i32
  }
  func.func @transform_5(%arg0: i32) -> (i32, i32) {
    %c0_i32 = arith.constant 0 : i32
    %c0_i32_0 = arith.constant 0 : i32
    %c0_i32_1 = arith.constant 0 : i32
    return %c0_i32, %c0_i32_0 : i32, i32
  }
  func.func @transform_6(%arg0: i32) -> (i32, i32) {
    %c0_i32 = arith.constant 0 : i32
    %c0_i32_0 = arith.constant 0 : i32
    %c0_i32_1 = arith.constant 0 : i32
    return %c0_i32, %c0_i32_0 : i32, i32
  }
  func.func @transform_7(%arg0: i32) -> (i32, i32) {
    %c0_i32 = arith.constant 0 : i32
    %c0_i32_0 = arith.constant 0 : i32
    %c0_i32_1 = arith.constant 0 : i32
    return %c0_i32, %c0_i32_0 : i32, i32
  }
  func.func @transform_8(%arg0: i32) -> (i32, i32) {
    %c0_i32 = arith.constant 0 : i32
    %c0_i32_0 = arith.constant 0 : i32
    %c0_i32_1 = arith.constant 0 : i32
    return %c0_i32, %c0_i32_0 : i32, i32
  }
  func.func @transform_9(%arg0: i32) -> (i32, i32) {
    %c0_i32 = arith.constant 0 : i32
    %c0_i32_0 = arith.constant 0 : i32
    %c0_i32_1 = arith.constant 0 : i32
    return %c0_i32, %c0_i32_0 : i32, i32
  }
  func.func @transform_10(%arg0: i32) -> (i32, i32, i32) {
    %c0_i32 = arith.constant 0 : i32
    %c0_i32_0 = arith.constant 0 : i32
    %c0_i32_1 = arith.constant 0 : i32
    return %arg0, %c0_i32, %c0_i32_0 : i32, i32, i32
  }
  func.func @transform_11(%arg0: i32) -> (i32, i32) {
    %c0_i32 = arith.constant 0 : i32
    %c0_i32_0 = arith.constant 0 : i32
    %c0_i32_1 = arith.constant 0 : i32
    return %c0_i32, %c0_i32_0 : i32, i32
  }
  func.func @transform_12(%arg0: i32) -> (i32, i32) {
    %c0_i32 = arith.constant 0 : i32
    %c0_i32_0 = arith.constant 0 : i32
    %c0_i32_1 = arith.constant 0 : i32
    return %c0_i32, %c0_i32_0 : i32, i32
  }
  func.func @transform_13(%arg0: i32) -> (i32, i32) {
    %c0_i32 = arith.constant 0 : i32
    %c0_i32_0 = arith.constant 0 : i32
    %c0_i32_1 = arith.constant 0 : i32
    return %c0_i32, %c0_i32_0 : i32, i32
  }
  func.func @transform_14(%arg0: i32) -> (i32, i32) {
    %c0_i32 = arith.constant 0 : i32
    %c0_i32_0 = arith.constant 0 : i32
    %c0_i32_1 = arith.constant 0 : i32
    return %c0_i32, %c0_i32_0 : i32, i32
  }
  func.func @transform_15(%arg0: i32) -> (i32, i32, i32) {
    %c0_i32 = arith.constant 0 : i32
    %c0_i32_0 = arith.constant 0 : i32
    %c0_i32_1 = arith.constant 0 : i32
    return %arg0, %c0_i32, %c0_i32_0 : i32, i32, i32
  }
}

</mosaic_0001>

<bundles_post_ra>
// kernel: block_forward.1
= control target key start
LH: loop header
LB: loop body
LE: loop exit
PB: predicated region body
PF: predicated region fallthrough
CT: control target
= control target key end

     0   :  { %s3417_s0 = inlined_call_operand.vmem [shape: f32[2,8,32], index: 0, kind: input, shape index: {}]   ;;  %s3418_s1 = inlined_call_operand.vmem [shape: f32[1,32], index: 1, kind: input, shape index: {}]   ;;  %s3419_s2 = inlined_call_operand.vmem [shape: f32[1,32], index: 2, kind: input, shape index: {}]   ;;  %s3420_s3 = inlined_call_operand.vmem [shape: bf16[32,96], index: 3, kind: input, shape index: {}]   ;;  %s3421_s4 = inlined_call_operand.vmem [shape: bf16[4,8,32], index: 4, kind: input, shape index: {}]   ;;  %s3422_s5 = inlined_call_operand.vmem [shape: f32[1,32], index: 5, kind: input, shape index: {}]   ;;  %s3423_s6 = inlined_call_operand.vmem [shape: f32[1,32], index: 6, kind: input, shape index: {}]   ;;  %s3424_s7 = inlined_call_operand.vmem [shape: f32[1,32], index: 7, kind: input, shape index: {}]   ;;  %s3425_s8 = inlined_call_operand.vmem [shape: bf16[32,256], index: 8, kind: input, shape index: {}]   ;;  %s3426_s9 = inlined_call_operand.vmem [shape: f32[1,256], index: 9, kind: input, shape index: {}]   ;;  %s3427_s10 = inlined_call_operand.vmem [shape: f32[2,8,128], index: 10, kind: input, shape index: {}]   ;;  %s3428_s11 = inlined_call_operand.vmem [shape: bf16[32,512], index: 11, kind: input, shape index: {}]   ;;  %s3429_s12 = inlined_call_operand.vmem [shape: f32[1,512], index: 12, kind: input, shape index: {}]   ;;  %s3430_s13 = inlined_call_operand.vmem [shape: bf16[512,32], index: 13, kind: input, shape index: {}]   ;;  %s3431_s14 = inlined_call_operand.vmem [shape: f32[128,32], index: 14, kind: input, shape index: {}]   ;;  %s3432_s15 = inlined_call_operand.hbm [shape: f32[2,8,32], index: 15, kind: output, shape index: {}]  }
   0x1   :  { %3434 = sst [smem:[#allocation6_spill]] %s3417_s0 }
   0x2   :  { %3435 = sst [smem:[#allocation7_spill]] %s3418_s1 }
   0x3   :  { %3436 = sst [smem:[#allocation8_spill]] %s3419_s2 }
   0x4   :  { %3437 = sst [smem:[#allocation9_spill]] %s3420_s3 }
   0x5   :  { %20 = vsyncpa [#allocation3], 0 }
   0x6   :  { %22 = vsyncpa [#allocation3 + $0x1], 0  ;;  %s2929_s18 = smov 0   ;;  %s2931_s19 = smov 0  }
   0x7   :  { %s2933_s20 = smov 0   ;;  %s2935_s21 = smov 0  }
   0x8 LB: > { %s2950_s22 = sadd.s32 4294967295, %s2831_s21   ;;  %s2331_s23 = sadd.s32 4294967294, %s2831_s21   ;;  %s2831_s21 = sphi %s2935_s21, %s3450_s21   ;;  %s2827_s20 = sphi %s2933_s20, %s3449_s20   ;;  %s2823_s19 = sphi %s2931_s19, %s3448_s19   ;;  %s2819_s18 = sphi %s2929_s18, %s3447_s18  }
   0x9   : > { %s2954_s24 = sadd.s32 1, %s2831_s21   ;;  %s360_s25 = sadd.s32 1, %s2827_s20 }
   0xa   : > { %s357_s26 = ssub.s32 %s2831_s21, %s2954_s24  ;;  %p370_p0 = scmp.ne.s32.totalorder %s2827_s20, %s2823_s19 }
   0xb   : > { %p358_p1 = scmp.eq.s32.totalorder %s357_s26, 0  ;;  %p371_p2 = scmp.eq.s32.totalorder %s2950_s22, 1 }
   0xc   : > { %p376_p3 = scmp.ne.s32.totalorder %s2823_s19, %s2819_s18  ;;  %p377_p4 = scmp.eq.s32.totalorder %s2331_s23, 1 }
   0xd   : > { %s2965_s27 = scalar_select %p358_p1, %s2827_s20, %s360_s25  }
   0xe   : > { %p2967_p5 = por %p371_p2, %p370_p0  ;;  %p2971_p6 = por %p377_p4, %p376_p3 }
   0xf   : > { %3438 = sst [smem:[#allocation5_spill]] %s2965_s27  ;;  %p2334_p7 = scmp.ge.s32.totalorder %s2831_s21, 1 }
  0x10   : > { %p448_p8 = scmp.lt.s32.totalorder %s2831_s21, 3 }
  0x12   : > { %p449_p9 = pnand %p2334_p7, %p448_p8 }
  0x13   : > { %p499_p10 = scmp.lt.s32.totalorder (!%p449_p9), %s2950_s22, 1  ;;  %vm511_vm0 = vcmask (!%p449_p9), 261120   ;;  %s3441_s0 = sld [smem:[#allocation6_spill]] (!%p449_p9)  ;;  %v2833_v8 = vmov (!%p449_p9), 0.0   ;;  %vm2834_vm1 = vmmov (!%p449_p9), 0   ;;  %vm608_vm2 = vcmask (!%p449_p9), 64512  }
  0x14   : > { %452 = sbr.rel (%p449_p9) target bundleno = 4961 (0x1361), region = 80  ;;  %s3442_s3 = sld [smem:[#allocation9_spill]] (!%p449_p9)  ;;  %2504 = vmatprep.subr.bf16.mxu0 (!%p449_p9), %v2833_v8  ;;  %2508 = vmatprep.mubr.msk.bf16.mxu0 (!%p449_p9), %vm2834_vm1, %v2833_v8  ;;  %v600_v26 = vlaneseq (!%p449_p9)  ;;  %vm947_vm4 = vcmask (!%p449_p9), 1043456  }
  0x15   : > { %2517 = vmatprep.subr.mxu1 (!%p449_p9), %v2833_v8  ;;  %2519 = vmatprep.mubr.msk.f32.mxu1 (!%p449_p9), %vm2834_vm1, %v2833_v8  ;;  %s3443_s1 = sld [smem:[#allocation7_spill]] (!%p449_p9)  ;;  %s3444_s2 = sld [smem:[#allocation8_spill]] (!%p449_p9) }
  0x16   : > { %s2835_s23 = smov (!%p449_p9), 64   ;;  %s2836_s27 = smov (!%p449_p9), 96   ;;  %v3028_v27 = vshrl.u32 (!%p449_p9), %v600_v26, 7  ;;  %v3030_v28 = vand.u32 (!%p449_p9), 127, %v600_v26 }
  0x17   : > { %s2838_s26 = smov (!%p449_p9), 80   ;;  %s2839_s17 = smov (!%p449_p9), 120  }
  0x18   : > { %vm604_vm3 = vcmp.le.s32.totalorder (!%p449_p9), %v3030_v28, %v3028_v27 }
  0x1a   : > { %v2689_v7 = vld [vmem:[%s3442_s3] sm:$0xff] (!%p449_p9)   ;;  %v2690_v9 = vld [vmem:[%s3442_s3 + $0x8] sm:$0xff] (!%p449_p9)  }
  0x1b   : > { %s2979_s30 = scalar_select %p499_p10, %s2950_s22, 1  ;;  %2505 = vmatpush3.bf16.msra.mxu0 %v2689_v7  ;;  %v2338_v14 = vld [vmem:[%s3443_s1] ss:$0 sm:$0xff] }
  0x1c   : > { %2506 = vmatprep.subr.bf16.mxu0 %v2833_v8  ;;  %v2339_v16 = vld [vmem:[%s3444_s2] ss:$0 sm:$0xff] }
  0x1d   : > { %s3433_s16 = sshll.u32 %s2979_s30, 3 }
  0x1e   : > { %s502_s25 = scalar_lea.vmem %s3441_s0, %s3433_s16 }
  0x1f   : > { %v2987_v0 = vld [vmem:[%s502_s25] sm:$0xff]  ;;  %2507 = vmatpush3.bf16.msra.mxu0 %v2690_v9  ;;  %s2837_s25 = smov 88  }
  0x20   : > { %v512_v1 = vsel %vm511_vm0, %v2987_v0, 0.0  ;;  %2512 = vmatprep.subr.mxu0 %v2833_v8 }
  0x21   : > { %513 = vadd.xlane.f32.xlu0 %v512_v1 }
  0xae   : > { %v514_v2 = vpop.xlane.xlu0 %513 }
  0xaf   : > { %v516_v3 = vmul.f32 0.03125, %v514_v2 }
  0xb1   : > { %v517_v4 = vsub.f32 %v2987_v0, %v516_v3 }
  0xb3   : > { %v518_v5 = vmul.f32 %v517_v4, %v517_v4 }
  0xb5   : > { %v519_v6 = vsel %vm511_vm0, %v518_v5, 0.0 }
  0xb6   : > { %520 = vadd.xlane.f32.xlu0 %v519_v6 }
 0x143   : > { %v521_v10 = vpop.xlane.xlu0 %520 }
 0x144   : > { %v522_v11 = vmul.f32 0.03125, %v521_v10  ;;  %v2349_v10 = vld [vmem:[%s3421_s4 + $0x4] sm:$0xf] }
 0x146   : > { %v523_v12 = vadd.f32 1e-05, %v522_v11  ;;  %v949_v11 = vsel %vm947_vm4, %v2349_v10, 0 }
 0x148   : > { %2741 = vrsqrt.f32 %v523_v12  ;;  %v773_v12 = vld [vmem:[%s3421_s4] sm:$0xf] }
 0x152   : > { %v2742_v13 = vpop.eup %2741 }
 0x153   : > { %v525_v15 = vmul.f32 %v2742_v13, %v517_v4 }
 0x155   : > { %v532_v17 = vmul.f32 %v2338_v14, %v525_v15 }
 0x157   : > { %v539_v18 = vadd.f32 %v2339_v16, %v532_v17  ;;  %v995_v17 = vsel %vm947_vm4, %v773_v12, 0 }
 0x159   : > { %v540_v19 = vpack.c.bf16 %v539_v18, %v539_v18 }
 0x15b   : > { %2509 = vmatmul.mubr.msk.bf16.vlgmr.msra.gmra.mrb[0].mxu0 %vm511_vm0, %v540_v19 }
 0x15c   : > { %2514 = vmatprep.mubr.msk.f32.mxu0 %vm2834_vm1, %v2833_v8 }
 0x22e   : > { %v3016_v20 = vpop.f32.mrb[0].mxu0 }
 0x22f   : > { %696 = vrot.lane.b32.xlu0 %v3016_v20, %s2835_s23  ;;  %606 = vrot.lane.b32.xlu1 %v3016_v20, %s2836_s27  ;;  %v2510_v21 = vpop.f32.mrb[1].mxu0  ;;  %s2840_s23 = smov 112   ;;  %s2841_s27 = smov 56  }
 0x230   : > { %v597_v22 = vpop.f32.mrb[2].mxu0 }
 0x231   : > { %v2511_v23 = vpop.f32.mrb[3].mxu0 }
 0x233   : > { %776 = vrot.lane.b32.xlu0 %v3016_v20, %s2837_s25  ;;  %s2842_s25 = smov 48  }
 0x2a1   : > { %v697_v24 = vpop.permute.xlu0 %696  ;;  %v607_v25 = vpop.permute.xlu1 %606 }
 0x2a2   : > { %2513 = vmatpush3.xpose.msk.msra.mxu0 %vm608_vm2, %v607_v25  ;;  %2518 = vmatpush3.msra.mxu1 %v697_v24  ;;  %v2355_v25 = vld [vmem:[%s3421_s4 + $0x8] sm:$0xf] }
 0x2a3   : > { %2522 = vmatprep.subr.mxu1 %v2833_v8  ;;  %2527 = vmatprep.subr.mxu0 %v2833_v8  ;;  %v1211_v26 = vsel %vm947_vm4, %v2355_v25, 0  ;;  %v2705_v25 = vld [vmem:[%s3428_s11 + $0xc] ss:$16 sps:$4 sm:$0xff]  }
 0x2a5   : > { %2515 = vmatmul.mubr.msk.f32.vlgmr.msra.gmra.mrb[4].mxu0 %vm608_vm2, %v3016_v20  ;;  %v777_v39 = vpop.permute.xlu0 %776 }
 0x2a6   : > { %2529 = vmatprep.mubr.msk.f32.mxu0 %vm2834_vm1, %v2833_v8 }
 0x378   : > { %v679_v29 = vpop.f32.mrb[4].mxu0 }
 0x379   : > { %v683_v30 = vmul.f32 0.17677669, %v679_v29  ;;  %v2516_v31 = vpop.f32.mrb[5].mxu0 }
 0x37b   : > { %v684_v32 = vsel %vm604_vm3, %v683_v30, -inf }
 0x37c   : > { %v685_v33 = vsel %vm608_vm2, %v684_v32, -inf }
 0x37d   : > { %686 = vmax.xlane.f32.xlu1 %v685_v33 }
 0x38e   : > { %1039 = vrot.lane.b32.xlu1 %v3016_v20, %s2838_s26  ;;  %s2843_s26 = smov 104  }
 0x40a   : > { %v687_v34 = vpop.xlane.xlu1 %686 }
 0x40b   : > { %v688_v35 = vsub.f32 %v684_v32, %v687_v34 }
 0x40d   : > { %v689_v36 = vmul.f32 1.442695, %v688_v35 }
 0x40e   : > { %v1040_v44 = vpop.permute.xlu1 %1039 }
 0x40f   : > { %2743 = vpow2.f32 %v689_v36 }
 0x419   : > { %v2744_v37 = vpop.eup %2743 }
 0x41a   : > { %v691_v38 = vsel %vm608_vm2, %v2744_v37, 0.0 }
 0x41b   : > { %692 = vadd.xlane.f32.xlu0 %v691_v38 }
 0x431   : > { %774 = vrot.lane.b32.xlu0 %v3016_v20, %s2839_s17  ;;  %s2844_s17 = smov 72  }
 0x435   : > { %1037 = vrot.lane.b32.xlu0 %v3016_v20, %s2840_s23 }
 0x4a8   : > { %v693_v40 = vpop.xlane.xlu0 %692 }
 0x4a9   : > { %2745 = vrcp.f32 %v693_v40 }
 0x4ac   : > { %v775_v43 = vpop.permute.xlu0 %774 }
 0x4b0   : > { %v1038_v45 = vpop.permute.xlu0 %1037 }
 0x4b3   : > { %v2746_v41 = vpop.eup %2745 }
 0x4b4   : > { %v695_v42 = vmul.f32 %v2746_v41, %v2744_v37 }
 0x4b6   : > { %2520 = vmatmul.mubr.msk.f32.vlgmr.msra.gmra.mrb[0].mxu1 %vm608_vm2, %v695_v42 }
 0x4b7   : > { %2523 = vmatpush3.xpose.msk.msra.mxu1 %vm608_vm2, %v777_v39  ;;  %2524 = vmatprep.mubr.msk.f32.mxu1 %vm2834_vm1, %v2833_v8 }
 0x4b8   : > { %2544 = vmatprep.subr.mxu1 %v2833_v8 }
 0x4ba   : > { %2525 = vmatmul.mubr.msk.f32.vlgmr.msra.gmra.mrb[2].mxu1 %vm608_vm2, %v775_v43 }
 0x4bb   : > { %2545 = vmatpush3.xpose.msk.msra.mxu1 %vm608_vm2, %v1040_v44  ;;  %2546 = vmatprep.mubr.msk.f32.mxu1 %vm2834_vm1, %v2833_v8 }
 0x4bc   : > { %2554 = vmatprep.subr.bf16.mxu1 %v2833_v8 }
 0x4be   : > { %2547 = vmatmul.mubr.msk.f32.vlgmr.msra.gmra.mrb[4].mxu1 %vm608_vm2, %v1038_v45 }
 0x4bf   : > { %2556 = vmatprep.mubr.msk.bf16.mxu1 %vm2834_vm1, %v2833_v8  ;;  %2555 = vmatpush3.bf16.msra.mxu1 %v1211_v26 }
 0x4c0   : > { %2570 = vmatprep.subr.bf16.mxu1 %v2833_v8 }
 0x589   : > { %v3055_v46 = vpop.f32.mrb[0].mxu1 }
 0x58a   : > { %v2521_v47 = vpop.f32.mrb[1].mxu1  ;;  %v772_v18 = vpack.c.bf16 %v3055_v46, %v3055_v46 }
 0x58d   : > { %v848_v48 = vpop.f32.mrb[2].mxu1 }
 0x58e   : > { %v852_v49 = vmul.f32 0.17677669, %v848_v48  ;;  %v2526_v50 = vpop.f32.mrb[3].mxu1 }
 0x590   : > { %v853_v51 = vsel %vm604_vm3, %v852_v49, -inf }
 0x591   : > { %v1111_v52 = vpop.f32.mrb[4].mxu1  ;;  %v854_v53 = vsel %vm608_vm2, %v853_v51, -inf }
 0x592   : > { %855 = vmax.xlane.f32.xlu0 %v854_v53  ;;  %v2548_v54 = vpop.f32.mrb[5].mxu1  ;;  %v1115_v59 = vmul.f32 0.17677669, %v1111_v52 }
 0x594   : > { %v1116_v62 = vsel %vm604_vm3, %v1115_v59, -inf }
 0x595   : > { %v1117_v63 = vsel %vm608_vm2, %v1116_v62, -inf }
 0x5a8   : > { %865 = vrot.lane.b32.xlu0 %v3016_v20, %s2841_s27  ;;  %s2845_s27 = smov 40  }
 0x5ac   : > { %1128 = vrot.lane.b32.xlu0 %v3016_v20, %s2842_s25 }
 0x5b0   : > { %1254 = vrot.lane.b32.xlu0 %v3016_v20, %s2843_s26  ;;  %s3445_s26 = sshll.u32 %s2979_s30, 3 }
 0x5b1   : > { %s506_s23 = scalar_lea.vmem %s3427_s10, %s3445_s26 }
 0x61f   : > { %v856_v55 = vpop.xlane.xlu0 %855 }
 0x620   : > { %v857_v56 = vsub.f32 %v853_v51, %v856_v55 }
 0x622   : > { %v858_v57 = vmul.f32 1.442695, %v857_v56 }
 0x623   : > { %v866_v58 = vpop.permute.xlu0 %865 }
 0x624   : > { %2747 = vpow2.f32 %v858_v57  ;;  %2528 = vmatpush3.msra.mxu0 %v866_v58 }
 0x625   : > { %2532 = vmatprep.subr.bf16.mxu0 %v2833_v8 }
 0x627   : > { %v1129_v19 = vpop.permute.xlu0 %1128 }
 0x62b   : > { %v1255_v24 = vpop.permute.xlu0 %1254 }
 0x62e   : > { %v2748_v60 = vpop.eup %2747 }
 0x62f   : > { %v860_v61 = vsel %vm608_vm2, %v2748_v60, 0.0 }
 0x630   : > { %861 = vadd.xlane.f32.xlu1 %v860_v61 }
 0x634   : > { %1118 = vmax.xlane.f32.xlu1 %v1117_v63 }
 0x6bd   : > { %v862_v1 = vpop.xlane.xlu1 %861 }
 0x6be   : > { %2749 = vrcp.f32 %v862_v1 }
 0x6c1   : > { %v1119_v2 = vpop.xlane.xlu1 %1118 }
 0x6c2   : > { %v1120_v3 = vsub.f32 %v1116_v62, %v1119_v2 }
 0x6c4   : > { %v1121_v4 = vmul.f32 1.442695, %v1120_v3 }
 0x6c6   : > { %2751 = vpow2.f32 %v1121_v4  ;;  %v2362_v4 = vld [vmem:[%s3422_s5] ss:$0 sm:$0xff] }
 0x6c8   : > { %v2750_v5 = vpop.eup %2749 }
 0x6c9   : > { %v864_v6 = vmul.f32 %v2750_v5, %v2748_v60 }
 0x6cb   : > { %2530 = vmatmul.mubr.msk.f32.vlgmr.msra.gmra.mrb[6].mxu0 %vm608_vm2, %v864_v6 }
 0x6cc   : > { %2534 = vmatprep.mubr.msk.bf16.mxu0 %vm2834_vm1, %v2833_v8  ;;  %2533 = vmatpush3.bf16.msra.mxu0 %v949_v11 }
 0x6cd   : > { %2538 = vmatprep.subr.bf16.mxu0 %v2833_v8 }
 0x6d0   : > { %v2752_v7 = vpop.eup %2751 }
 0x6d1   : > { %v1123_v9 = vsel %vm608_vm2, %v2752_v7, 0.0 }
 0x6d2   : > { %1124 = vadd.xlane.f32.xlu1 %v1123_v9 }
 0x6e3   : > { %1256 = vrot.lane.b32.xlu1 %v3016_v20, %s2844_s17  ;;  %s496_s17 = sand.u32 1, %s2823_s19  }
 0x6e4   : > { %s2335_s16 = sshll.u32 %s496_s17, 3 }
 0x6e5   : > { %s498_s30 = scalar_lea.vmem [#allocation2], %s2335_s16 }
 0x6e6   : > { %s2260_s0 = sshll.u32 %s498_s30, 4  ;;  %s3376_s0 = int_to_ptr.vmem [resolvable:$true] %s2260_s0 }
 0x6e7   : > { %s2769_s25 = scalar_lea.vmem %s3376_s0, 128 }
 0x6e8   : > { %p2770_p11 = scmp.ne.s32.totalorder %s3376_s0, %s2769_s25 }
 0x6ea   : > { %p2771_p12 = pnand %p2770_p11, %p2967_p5 }
 0x6ec   : > { %p2772_p13 = pneg %p2771_p12 }
 0x75f   : > { %v1125_v14 = vpop.xlane.xlu1 %1124 }
 0x760   : > { %2753 = vrcp.f32 %v1125_v14 }
 0x763   : > { %v1257_v23 = vpop.permute.xlu1 %1256 }
 0x76a   : > { %v2754_v21 = vpop.eup %2753 }
 0x76b   : > { %v1127_v22 = vmul.f32 %v2754_v21, %v2752_v7  ;;  %v2702_v21 = vld [vmem:[%s3428_s11 + $0x24] ss:$16 sps:$4 sm:$0xff]  }
 0x79e   : > { %v937_v13 = vpop.f32.mrb[6].mxu0 }
 0x79f   : > { %v941_v15 = vpack.c.bf16 %v937_v13, %v937_v13  ;;  %v2531_v16 = vpop.f32.mrb[7].mxu0 }
 0x7a0   : > { %v2693_v16 = vld [vmem:[%s3425_s8 + $0x4] ss:$8 sps:$4 sm:$0xff]  }
 0x7a1   : > { %2535 = vmatmul.mubr.msk.bf16.vlgmr.msra.gmra.mrb[8].mxu0 %vm608_vm2, %v941_v15 }
 0x7a2   : > { %2539 = vmatpush3.bf16.msra.mxu0 %v995_v17  ;;  %2540 = vmatprep.mubr.msk.bf16.mxu0 %vm2834_vm1, %v2833_v8  ;;  %v2691_v17 = vld [vmem:[%s3425_s8] ss:$8 sps:$4 sm:$0xff]  }
 0x7a3   : > { %2549 = vmatprep.subr.mxu0 %v2833_v8 }
 0x7a9   : > { %2541 = vmatmul.mubr.msk.bf16.vlgmr.msra.gmra.mrb[12].mxu0 %vm608_vm2, %v772_v18  ;;  %v2694_v18 = vld [vmem:[%s3428_s11] ss:$16 sps:$4 sm:$0xff]  }
 0x7aa   : > { %2550 = vmatpush3.msra.mxu0 %v1129_v19  ;;  %2551 = vmatprep.mubr.msk.f32.mxu0 %vm2834_vm1, %v2833_v8  ;;  %v2699_v19 = vld [vmem:[%s3425_s8 + $0x14] ss:$8 sps:$4 sm:$0xff]  }
 0x7ab   : > { %2560 = vmatprep.subr.mxu0 %v2833_v8 }
 0x7b1   : > { %2552 = vmatmul.mubr.msk.f32.vlgmr.msra.gmra.mrb[16].mxu0 %vm608_vm2, %v1127_v22  ;;  %v2697_v22 = vld [vmem:[%s3425_s8 + $0x10] ss:$8 sps:$4 sm:$0xff]  }
 0x7b2   : > { %2561 = vmatpush3.xpose.msk.msra.mxu0 %vm608_vm2, %v1257_v23  ;;  %2562 = vmatprep.mubr.msk.f32.mxu0 %vm2834_vm1, %v2833_v8  ;;  %v2700_v23 = vld [vmem:[%s3428_s11 + $0x20] ss:$16 sps:$4 sm:$0xff]  }
 0x7b3   : > { %2565 = vmatprep.subr.mxu0 %v2833_v8 }
 0x7b5   : > { %2563 = vmatmul.mubr.msk.f32.vlgmr.msra.gmra.mrb[18].mxu0 %vm608_vm2, %v1255_v24  ;;  %v2846_v24 = vmov 0  }
 0x7b6   : > { %2567 = vmatprep.mubr.msk.f32.mxu0 %vm2834_vm1, %v2833_v8 }
 0x874   : > { %v985_v29 = vpop.f32.mrb[8].mxu0 }
 0x875   : > { %v2536_v30 = vpop.f32.mrb[9].mxu0 }
 0x876   : > { %v988_v31 = vpop.f32.mrb[10].mxu0 }
 0x877   : > { %v2537_v32 = vpop.f32.mrb[11].mxu0 }
 0x878   : > { %v2363_v32 = vld [vmem:[%s3423_s6] ss:$0 sm:$0xff] }
 0x87c   : > { %v1031_v33 = vpop.f32.mrb[12].mxu0 }
 0x87d   : > { %v1032_v34 = vadd.f32 %v1031_v33, %v985_v29  ;;  %v2542_v35 = vpop.f32.mrb[13].mxu0 }
 0x87e   : > { %v1034_v36 = vpop.f32.mrb[14].mxu0 }
 0x87f   : > { %v2543_v37 = vpop.f32.mrb[15].mxu0 }
 0x880   : > { %v2703_v37 = vld [vmem:[%s3428_s11 + $0x8] ss:$16 sps:$4 sm:$0xff]  }
 0x884   : > { %v1200_v38 = vpop.f32.mrb[16].mxu0 }
 0x885   : > { %v1204_v39 = vpack.c.bf16 %v1200_v38, %v1200_v38  ;;  %v2553_v40 = vpop.f32.mrb[17].mxu0 }
 0x886   : > { %v2706_v40 = vld [vmem:[%s3428_s11 + $0x28] ss:$16 sps:$4 sm:$0xff]  }
 0x887   : > { %2557 = vmatmul.mubr.msk.bf16.vlgmr.msra.gmra.mrb[8].mxu1 %vm608_vm2, %v1204_v39  ;;  %v2708_v39 = vld [vmem:[%s3428_s11 + $0x2c] ss:$16 sps:$4 sm:$0xff]  }
 0x888   : > { %v1328_v41 = vpop.f32.mrb[18].mxu0  ;;  %2572 = vmatprep.mubr.msk.bf16.mxu1 %vm2834_vm1, %v2833_v8 }
 0x889   : > { %v1332_v42 = vmul.f32 0.17677669, %v1328_v41  ;;  %v2564_v43 = vpop.f32.mrb[19].mxu0  ;;  %v1522_v41 = vsub.s32 1, %v3028_v27 }
 0x88a   : > { %v3186_v43 = vld [vmem:[%s3429_s12] sm:$0xf] }
 0x88b   : > { %v1333_v44 = vsel %vm604_vm3, %v1332_v42, -inf  ;;  %v1514_v42 = vld [vmem:[%s3426_s9] sm:$0x3] }
 0x88c   : > { %v1334_v45 = vsel %vm608_vm2, %v1333_v44, -inf }
 0x88d   : > { %1335 = vmax.xlane.f32.xlu0 %v1334_v45  ;;  %v1675_v45 = vrot.slane %v3186_v43, %v1522_v41 }
 0x8a3   : > { %1345 = vrot.lane.b32.xlu0 %v3016_v20, %s2845_s27  ;;  %v2360_v20 = vld [vmem:[%s3421_s4 + $0xc] sm:$0xf]  ;;  %s2247_s27 = scalar_lea.sflag [#allocation3], %s496_s17 }
 0x8a4   : > { %v1428_v60 = vsel %vm947_vm4, %v2360_v20, 0 }
 0x8a5   : > { %2571 = vmatpush3.bf16.msra.mxu1 %v1428_v60 }
 0x91a   : > { %v1336_v46 = vpop.xlane.xlu0 %1335 }
 0x91b   : > { %v1337_v47 = vsub.f32 %v1333_v44, %v1336_v46  ;;  %v1523_v44 = vrot.slane %v1514_v42, %v1522_v41 }
 0x91d   : > { %v1338_v48 = vmul.f32 1.442695, %v1337_v47 }
 0x91e   : > { %v1346_v49 = vpop.permute.xlu0 %1345 }
 0x91f   : > { %2755 = vpow2.f32 %v1338_v48  ;;  %2566 = vmatpush3.msra.mxu0 %v1346_v49 }
 0x920   : > { %1549 = vmatprep.subr.bf16.mxu0 %v2693_v16 }
 0x929   : > { %v2756_v50 = vpop.eup %2755 }
 0x92a   : > { %v1340_v51 = vsel %vm608_vm2, %v2756_v50, 0.0 }
 0x92b   : > { %1341 = vadd.xlane.f32.xlu1 %v1340_v51 }
 0x95a   : > { %v1247_v52 = vpop.f32.mrb[8].mxu1 }
 0x95b   : > { %v1253_v53 = vadd.f32 %v1247_v52, %v1032_v34  ;;  %v2558_v54 = vpop.f32.mrb[9].mxu1  ;;  %v2364_v34 = vld [vmem:[%s3424_s7] ss:$0 sm:$0xff] }
 0x95c   : > { %v1250_v55 = vpop.f32.mrb[10].mxu1 }
 0x95d   : > { %v2559_v56 = vpop.f32.mrb[11].mxu1 }
 0x9b8   : > { %v1342_v57 = vpop.xlane.xlu1 %1341 }
 0x9b9   : > { %2757 = vrcp.f32 %v1342_v57 }
 0x9c3   : > { %v2758_v58 = vpop.eup %2757 }
 0x9c4   : > { %v1344_v59 = vmul.f32 %v2758_v58, %v2756_v50 }
 0x9c6   : > { %2568 = vmatmul.mubr.msk.f32.vlgmr.msra.gmra.mrb[20].mxu0 %vm608_vm2, %v1344_v59 }
 0x9c7   : > { %1550 = vmatpush1.bf16.msra.mxu0 %v2691_v17  ;;  %1581 = vmatprep.mubr.bf16.mxu0 %v2846_v24 }
 0x9c8   : > { %1551 = vmatprep.subr.bf16.mxu0 %v2699_v19 }
 0x9cb   : > { %1552 = vmatpush1.bf16.msra.mxu0 %v2697_v22 }
 0x9cc   : > { %1769 = vmatprep.subr.bf16.mxu0 %v2705_v25 }
 0xa99   : > { %v1417_v61 = vpop.f32.mrb[20].mxu0 }
 0xa9a   : > { %v1421_v62 = vpack.c.bf16 %v1417_v61, %v1417_v61  ;;  %v2569_v63 = vpop.f32.mrb[21].mxu0 }
 0xa9c   : > { %2573 = vmatmul.mubr.msk.bf16.vlgmr.msra.gmra.mrb[12].mxu1 %vm608_vm2, %v1421_v62 }
 0xa9d   : > { %1760 = vmatprep.mubr.bf16.mxu1 %v2846_v24 }
 0xb6f   : > { %v1464_v1 = vpop.f32.mrb[12].mxu1 }
 0xb70   : > { %v1470_v2 = vadd.f32 %v1464_v1, %v1253_v53  ;;  %v2574_v3 = vpop.f32.mrb[13].mxu1 }
 0xb71   : > { %v1467_v5 = vpop.f32.mrb[14].mxu1 }
 0xb72   : > { %v1471_v6 = vadd.f32 %v1470_v2, %v2987_v0  ;;  %v2575_v7 = vpop.f32.mrb[15].mxu1  ;;  %v2696_v0 = vld [vmem:[%s3428_s11 + $0x4] ss:$16 sps:$4 sm:$0xff]   ;;  %v1518_v2 = vsub.s32 0, %v3028_v27 }
 0xb73   : > { %1728 = vmatprep.subr.bf16.mxu1 %v2696_v0 }
 0xb74   : > { %v3126_v9 = vadd.f32 %v2362_v4, %v1471_v6  ;;  %1729 = vmatpush1.bf16.msra.mxu1 %v2694_v18  ;;  %v1519_v7 = vrot.slane %v1514_v42, %v1518_v2 }
 0xb75   : > { %1730 = vmatprep.subr.bf16.mxu1 %v2702_v21 }
 0xb76   : > { %v1482_v10 = vsel %vm511_vm0, %v3126_v9, 0.0 }
 0xb77   : > { %1483 = vadd.xlane.f32.xlu1 %v1482_v10 }
 0xb78   : > { %1731 = vmatpush1.bf16.msra.mxu1 %v2700_v23 }
 0xc04   : > { %v1484_v11 = vpop.xlane.xlu1 %1483 }
 0xc05   : > { %v1485_v12 = vmul.f32 0.03125, %v1484_v11  ;;  %v1605_v11 = vld [vmem:[%s506_s23] sm:$0xff]  ;;  %s2413_s23 = sshll.u32 %s2950_s22, 7  ;;  %s2848_s22 = smov [#allocation2]  }
 0xc06   : > { %s3374_s3 = scalar_lea.hbm %s3432_s15, %s2413_s23  ;;  %s2773_s26 = sshll.u32 %s2848_s22, 4  ;;  %s2774_s26 = int_to_ptr.vmem [resolvable:$false] %s2773_s26 }
 0xc07   : > { %v1486_v13 = vsub.f32 %v3126_v9, %v1485_v12  ;;  %s2775_s16 = scalar_lea.vmem %s2774_s26, 256  ;;  %p2776_p0 = scmp.lt.s32.totalorder %s3376_s0, %s2774_s26 }
 0xc08   : > { %p2777_p1 = scmp.lt.s32.totalorder %s2775_s16, %s2769_s25 }
 0xc09   : > { %v1487_v14 = vmul.f32 %v1486_v13, %v1486_v13 }
 0xc0a   : > { %p2778_p2 = por %p2777_p1, %p2776_p0 }
 0xc0b   : > { %v1488_v15 = vsel %vm511_vm0, %v1487_v14, 0.0 }
 0xc0c   : > { %1489 = vadd.xlane.f32.xlu1 %v1488_v15  ;;  %p2779_p3 = pnand %p2778_p2, %p2772_p13 }
 0xc99   : > { %v1490_v26 = vpop.xlane.xlu1 %1489 }
 0xc9a   : > { %v1491_v29 = vmul.f32 0.03125, %v1490_v26 }
 0xc9c   : > { %v1492_v30 = vadd.f32 1e-05, %v1491_v29 }
 0xc9e   : > { %2759 = vrsqrt.f32 %v1492_v30 }
 0xca8   : > { %v2760_v31 = vpop.eup %2759 }
 0xca9   : > { %v1494_v33 = vmul.f32 %v2760_v31, %v1486_v13 }
 0xcab   : > { %v1501_v35 = vmul.f32 %v2363_v32, %v1494_v33 }
 0xcad   : > { %v1508_v36 = vadd.f32 %v2364_v34, %v1501_v35 }
 0xcaf   : > { %v1509_v38 = vpack.c.bf16 %v1508_v36, %v1508_v36 }
 0xcb1   : > { %2369 = vmatmul.mubr.msk.bf16.vlgmr.msra.gmra.mrb[24].mxu0 %vm511_vm0, %v1509_v38  ;;  %2378 = vmatmul.mubr.msk.bf16.vlgmr.msra.gmra.mrb[16].mxu1 %vm511_vm0, %v1509_v38 }
 0xcb2   : > { %1770 = vmatpush1.bf16.msra.mxu0 %v2703_v37  ;;  %1801 = vmatprep.mubr.bf16.mxu0 %v2846_v24 }
 0xcb3   : > { %1771 = vmatprep.subr.bf16.mxu0 %v2708_v39  ;;  %2608 = vmatprep.mubr.msk.f32.mxu1 %vm2834_vm1, %v2833_v8 }
 0xcb6   : > { %1772 = vmatpush1.bf16.msra.mxu0 %v2706_v40 }
 0xcb9   : > { %2379 = vmatmul.mubr.msk.bf16.vlgmr.msra.gmra.mrb[28].mxu0 %vm511_vm0, %v1509_v38 }
 0xd84   : > { %v1583_v46 = vpop.f32.mrb[24].mxu0  ;;  %v3189_v47 = vpop.f32.mrb[16].mxu1 }
 0xd85   : > { %v1585_v8 = vpop.f32.mrb[25].mxu0  ;;  %v1764_v48 = vpop.f32.mrb[17].mxu1  ;;  %v1584_v14 = vadd.f32 %v1583_v46, %v1519_v7  ;;  %v1894_v7 = vld [vmem:[%s3431_s14 + $0x40] sm:$0xff] }
 0xd86   : > { %v1586_v49 = vadd.f32 %v1585_v8, %v1523_v44  ;;  %v3191_v50 = vadd.f32 %v1764_v48, %v1675_v45  ;;  %v1587_v51 = vpop.f32.mrb[26].mxu0  ;;  %v1766_v52 = vpop.f32.mrb[18].mxu1  ;;  %v1886_v48 = vld [vmem:[%s3431_s14] sm:$0xff] }
 0xd87   : > { %v1588_v53 = vpop.f32.mrb[27].mxu0  ;;  %v1767_v54 = vpop.f32.mrb[19].mxu1  ;;  %v1888_v51 = vld [vmem:[%s3431_s14 + $0x10] sm:$0xff]  ;;  %v2847_v52 = vmov 0.0|0.0  }
 0xd88   : > { %v1591_v55 = vand.u32 2147483647, %v1586_v49  ;;  %v1590_v10 = vmax.f32 %v1586_v49, 0.0  ;;  %v1887_v49 = vld [vmem:[%s3431_s14 + $0x8] sm:$0xff]  ;;  %2611 = vmatprep.subr.bf16.mxu1 %v2847_v52  ;;  %v2709_v54 = vld [vmem:[%s3430_s13 + $0x40] sm:$0xff]  }
 0xd89   : > { %v2612_v53 = vpack.c.bf16 %v1887_v49, %v1886_v48  ;;  %2460 = vmatprep.subr.bf16.mxu0 %v2709_v54 }
 0xd8a   : > { %v1592_v56 = vsub.f32 0.0, %v1591_v55  ;;  %v2710_v55 = vld [vmem:[%s3430_s13] sm:$0xff]  }
 0xd8b   : > { %2613 = vmatpush3.bf16.msra.mxu1 %v2612_v53  ;;  %2461 = vmatpush3.bf16.msra.mxu0 %v2710_v55  ;;  %v2730_v55 = vld [vmem:[%s3430_s13 + $0x90] sm:$0xff]  }
 0xd8c   : > { %v1593_v57 = vmul.f32 1.442695, %v1592_v56  ;;  %v3193_v58 = vpop.f32.mrb[28].mxu0  ;;  %v2711_v56 = vld [vmem:[%s3430_s13 + $0x48] sm:$0xff]   ;;  %2614 = vmatprep.subr.bf16.mxu1 %v2847_v52 }
 0xd8d   : > { %v3195_v59 = vpop.f32.mrb[29].mxu0  ;;  %2462 = vmatprep.subr.bf16.mxu0 %v2711_v56  ;;  %v2731_v56 = vld [vmem:[%s3430_s13 + $0xd8] sm:$0xff]  }
 0xd8e   : > { %2761 = vpow2.f32 %v1593_v57  ;;  %v1807_v20 = vpop.f32.mrb[30].mxu0 }
 0xd8f   : > { %v1808_v60 = vpop.f32.mrb[31].mxu0  ;;  %v1890_v20 = vld [vmem:[%s3431_s14 + $0x20] sm:$0xff] }
 0xd90   : > { %v1891_v60 = vld [vmem:[%s3431_s14 + $0x28] sm:$0xff] }
 0xd98   : > { %v2762_v61 = vpop.eup %2761 }
 0xd99   : > { %v1595_v62 = vadd.f32 1.0, %v2762_v61  ;;  %v1598_v63 = vmul.f32 -0.5, %v2762_v61  ;;  %v1601_v3 = vand.u32 2147483647, %v2762_v61 }
 0xd9b   : > { %2763 = vlog2.f32 %v1595_v62  ;;  %v1599_v1 = vadd.f32 1.0, %v1598_v63  ;;  %vm1602_vm5 = vcmp.lt.f32.partialorder %v1601_v3, 0.0004427343  ;;  %v2713_v62 = vld [vmem:[%s3430_s13 + $0x50] sm:$0xff]   ;;  %v2618_v63 = vpack.c.bf16 %v1891_v60, %v1890_v20  ;;  %v1893_v3 = vld [vmem:[%s3431_s14 + $0x38] sm:$0xff]  ;;  %v2733_v20 = vld [vmem:[%s3430_s13 + $0xe0] sm:$0xff]  }
 0xd9c   : > { %v1678_v60 = vsub.s32 2, %v3028_v27 }
 0xd9d   : > { %v1600_v6 = vmul.f32 %v2762_v61, %v1599_v1  ;;  %v2712_v61 = vld [vmem:[%s3430_s13 + $0x8] sm:$0xff]   ;;  %v1892_v1 = vld [vmem:[%s3431_s14 + $0x30] sm:$0xff] }
 0xd9e   : > { %2463 = vmatpush3.bf16.msra.mxu0 %v2712_v61  ;;  %v2734_v61 = vld [vmem:[%s3430_s13 + $0xa0] sm:$0xff]  }
 0xd9f   : > { %2464 = vmatprep.subr.bf16.mxu0 %v2713_v62  ;;  %v2735_v62 = vld [vmem:[%s3430_s13 + $0xe8] sm:$0xff]  }
 0xda5   : > { %v2764_v4 = vpop.eup %2763 }
 0xda6   : > { %v1597_v5 = vmul.f32 0.6931472, %v2764_v4  ;;  %v2714_v4 = vld [vmem:[%s3430_s13 + $0x10] sm:$0xff]  }
 0xda7   : > { %2465 = vmatpush3.bf16.msra.mxu0 %v2714_v4  ;;  %v2738_v4 = vld [vmem:[%s3430_s13 + $0xb0] sm:$0xff]  }
 0xda8   : > { %v1603_v12 = vsel %vm1602_vm5, %v1600_v6, %v1597_v5  ;;  %v2715_v5 = vld [vmem:[%s3430_s13 + $0x58] sm:$0xff]   ;;  %v2621_v6 = vpack.c.bf16 %v1893_v3, %v1892_v1  ;;  %v2736_v1 = vld [vmem:[%s3430_s13 + $0xa8] sm:$0xff]  }
 0xda9   : > { %v1604_v13 = vadd.f32 %v1603_v12, %v1590_v10  ;;  %v1895_v10 = vld [vmem:[%s3431_s14 + $0x48] sm:$0xff]  ;;  %2466 = vmatprep.subr.bf16.mxu0 %v2715_v5 }
 0xdaa   : > { %v2624_v12 = vpack.c.bf16 %v1895_v10, %v1894_v7 }
 0xdab   : > { %v1606_v15 = vmul.f32 %v1605_v11, %v1604_v13  ;;  %v2716_v11 = vld [vmem:[%s3430_s13 + $0x18] sm:$0xff]  }
 0xdac   : > { %2467 = vmatpush3.bf16.msra.mxu0 %v2716_v11 }
 0xdad   : > { %v1607_v16 = vadd.f32 %v1606_v15, %v1584_v14 }
 0xdaf   : > { %1608 = vmax.xlane.f32.xlu0 %v1607_v16 }
 0xe3c   : > { %v1609_v0 = vpop.xlane.xlu0 %1608 }
 0xe3d   : > { %vm1610_vm6 = vcmp.eq.f32.partialorder %v1607_v16, %v1609_v0  ;;  %v1896_v0 = vld [vmem:[%s3431_s14 + $0x50] sm:$0xff] }
 0xe3e   : > { %v1611_v17 = vsel %vm1610_vm6, %v3030_v28, 128 }
 0xe3f   : > { %v1613_v18 = vshra.s32 %v1611_v17, 16  ;;  %v1612_v21 = vand.u32 65535, %v1611_v17  ;;  %v1897_v17 = vld [vmem:[%s3431_s14 + $0x58] sm:$0xff] }
 0xe41   : > { %v1615_v19 = vcvt.s32.f32 %v1613_v18  ;;  %v1614_v23 = vcvt.s32.f32 %v1612_v21  ;;  %v2627_v18 = vpack.c.bf16 %v1897_v17, %v1896_v0  ;;  %v2718_v21 = vld [vmem:[%s3430_s13 + $0x20] sm:$0xff]  }
 0xe43   : > { %1616 = vmin.xlane.f32.xlu1 %v1615_v19 }
 0xed0   : > { %v1617_v22 = vpop.xlane.xlu1 %1616 }
 0xed1   : > { %vm1618_vm7 = vcmp.eq.f32.partialorder %v1615_v19, %v1617_v22  ;;  %v1623_v25 = vcvt.f32.s32 %v1617_v22  ;;  %v2717_v19 = vld [vmem:[%s3430_s13 + $0x60] sm:$0xff]  }
 0xed2   : > { %v1619_v24 = vsel %vm1618_vm7, %v1614_v23, inf  ;;  %2468 = vmatprep.subr.bf16.mxu0 %v2717_v19  ;;  %v1898_v22 = vld [vmem:[%s3431_s14 + $0x60] sm:$0xff]  ;;  %v1899_v23 = vld [vmem:[%s3431_s14 + $0x68] sm:$0xff] }
 0xed3   : > { %1620 = vmin.xlane.f32.xlu1 %v1619_v24  ;;  %v1624_v29 = vshll.u32 %v1623_v25, 16  ;;  %2469 = vmatpush3.bf16.msra.mxu0 %v2718_v21  ;;  %v2630_v24 = vpack.c.bf16 %v1899_v23, %v1898_v22  ;;  %v2719_v25 = vld [vmem:[%s3430_s13 + $0x68] sm:$0xff]  }
 0xed4   : > { %2470 = vmatprep.subr.bf16.mxu0 %v2719_v25 }
 0xf60   : > { %v1621_v26 = vpop.xlane.xlu1 %1620 }
 0xf61   : > { %v1622_v30 = vcvt.f32.s32 %v1621_v26  ;;  %v2720_v26 = vld [vmem:[%s3430_s13 + $0x28] sm:$0xff]  }
 0xf62   : > { %2471 = vmatpush3.bf16.msra.mxu0 %v2720_v26 }
 0xf63   : > { %v1625_v31 = vadd.s32 %v1624_v29, %v1622_v30  ;;  %v1900_v29 = vld [vmem:[%s3431_s14 + $0x70] sm:$0xff]  ;;  %v1901_v30 = vld [vmem:[%s3431_s14 + $0x78] sm:$0xff] }
 0xf65   : > { %vm1626_vm8 = vcmp.eq.s32.totalorder %v3030_v28, %v1625_v31  ;;  %v2633_v31 = vpack.c.bf16 %v1901_v30, %v1900_v29 }
 0xf66   : > { %v1627_v32 = vsel %vm1626_vm8, -inf, %v1607_v16 }
 0xf67   : > { %1628 = vmax.xlane.f32.xlu1 %v1627_v32 }
 0xff4   : > { %v1629_v33 = vpop.xlane.xlu1 %1628 }
 0xff5   : > { %vm1630_vm9 = vcmp.eq.f32.partialorder %v1627_v32, %v1629_v33  ;;  %v2721_v32 = vld [vmem:[%s3430_s13 + $0x70] sm:$0xff]  }
 0xff6   : > { %v1631_v34 = vsel %vm1630_vm9, %v3030_v28, 128  ;;  %v2722_v33 = vld [vmem:[%s3430_s13 + $0x30] sm:$0xff]   ;;  %2472 = vmatprep.subr.bf16.mxu0 %v2721_v32 }
 0xff7   : > { %v1633_v35 = vshra.s32 %v1631_v34, 16  ;;  %v1632_v37 = vand.u32 65535, %v1631_v34  ;;  %v2723_v34 = vld [vmem:[%s3430_s13 + $0xc0] sm:$0xff]   ;;  %2473 = vmatpush3.bf16.msra.mxu0 %v2722_v33 }
 0xff9   : > { %v1635_v36 = vcvt.s32.f32 %v1633_v35  ;;  %v1634_v39 = vcvt.s32.f32 %v1632_v37  ;;  %v2725_v35 = vld [vmem:[%s3430_s13 + $0x78] sm:$0xff]   ;;  %v1682_v37 = vsub.s32 3, %v3028_v27  ;;  %v2737_v27 = vld [vmem:[%s3430_s13 + $0xf0] sm:$0xff]  }
 0xffa   : > { %2474 = vmatprep.subr.bf16.mxu0 %v2725_v35 }
 0xffb   : > { %1636 = vmin.xlane.f32.xlu1 %v1635_v36 }
0x1088   : > { %v1637_v38 = vpop.xlane.xlu1 %1636 }
0x1089   : > { %vm1638_vm10 = vcmp.eq.f32.partialorder %v1635_v36, %v1637_v38  ;;  %v1643_v41 = vcvt.f32.s32 %v1637_v38  ;;  %v2726_v36 = vld [vmem:[%s3430_s13 + $0x38] sm:$0xff]  }
0x108a   : > { %v1639_v40 = vsel %vm1638_vm10, %v1634_v39, inf  ;;  %2475 = vmatpush3.bf16.msra.mxu0 %v2726_v36  ;;  %v1671_v39 = vrot.slane %v3186_v43, %v1518_v2  ;;  %v2727_v2 = vld [vmem:[%s3430_s13 + $0xc8] sm:$0xff]  }
0x108b   : > { %1640 = vmin.xlane.f32.xlu1 %v1639_v40  ;;  %v1644_v44 = vshll.u32 %v1643_v41, 16  ;;  %v1683_v40 = vrot.slane %v3186_v43, %v1682_v37 }
0x108c   : > { %v1763_v41 = vadd.f32 %v3189_v47, %v1671_v39 }
0x1118   : > { %v1641_v42 = vpop.xlane.xlu1 %1640 }
0x1119   : > { %v1642_v45 = vcvt.f32.s32 %v1641_v42  ;;  %v1806_v42 = vadd.f32 %v3195_v59, %v1683_v40  ;;  %v2728_v59 = vld [vmem:[%s3430_s13 + $0x88] sm:$0xff]  }
0x111b   : > { %v1645_v46 = vadd.s32 %v1644_v44, %v1642_v45  ;;  %v2724_v45 = vld [vmem:[%s3430_s13 + $0x80] sm:$0xff]   ;;  %v1813_v48 = vmax.f32 %v1806_v42, 0.0 }
0x111d   : > { %vm1646_vm11 = vcmp.eq.s32.totalorder %v3030_v28, %v1645_v46  ;;  %v1889_v28 = vld [vmem:[%s3431_s14 + $0x18] sm:$0xff]  ;;  %v1810_v46 = vmax.f32 %v1763_v41, 0.0 }
0x111e   : > { %vm1647_vm12 = vmor %vm1626_vm8, %vm1646_vm11  ;;  %v2615_v57 = vpack.c.bf16 %v1889_v28, %v1888_v51 }
0x111f   : > { %v1648_v8 = vsel %vm1647_vm12, %v1607_v16, -inf }
0x1120   : > { %1649 = vmax.xlane.f32.xlu1 %v1648_v8  ;;  %2616 = vmatpush3.bf16.msra.mxu1 %v2615_v57  ;;  %v2732_v57 = vld [vmem:[%s3430_s13 + $0x98] sm:$0xff]  }
0x1121   : > { %2617 = vmatprep.subr.bf16.mxu1 %v2847_v52 }
0x1124   : > { %2619 = vmatpush3.bf16.msra.mxu1 %v2618_v63  ;;  %v1679_v63 = vrot.slane %v3186_v43, %v1678_v60  ;;  %v2739_v43 = vld [vmem:[%s3430_s13 + $0xf8] sm:$0xff]  }
0x1125   : > { %2620 = vmatprep.subr.bf16.mxu1 %v2847_v52 }
0x1126   : > { %v1804_v3 = vadd.f32 %v3193_v58, %v1679_v63 }
0x1128   : > { %2622 = vmatpush3.bf16.msra.mxu1 %v2621_v6  ;;  %v1812_v5 = vmax.f32 %v1804_v3, 0.0  ;;  %v2740_v6 = vld [vmem:[%s3430_s13 + $0xb8] sm:$0xff]  }
0x1129   : > { %2623 = vmatprep.subr.bf16.mxu1 %v2847_v52 }
0x112c   : > { %2625 = vmatpush3.bf16.msra.mxu1 %v2624_v12 }
0x112d   : > { %2626 = vmatprep.subr.bf16.mxu1 %v2847_v52 }
0x1130   : > { %2628 = vmatpush3.bf16.msra.mxu1 %v2627_v18 }
0x1131   : > { %2629 = vmatprep.subr.bf16.mxu1 %v2847_v52 }
0x1134   : > { %2631 = vmatpush3.bf16.msra.mxu1 %v2630_v24 }
0x1135   : > { %2632 = vmatprep.subr.bf16.mxu1 %v2847_v52 }
0x1138   : > { %2634 = vmatpush3.bf16.msra.mxu1 %v2633_v31 }
0x1139   : > { %2482 = vmatprep.subr.bf16.mxu1 %v2723_v34 }
0x11ad   : > { %v1650_v13 = vpop.xlane.xlu1 %1649 }
0x11ae   : > { %v1651_v14 = vsub.f32 %v1648_v8, %v1650_v13  ;;  %v1811_v8 = vmax.f32 %v3191_v50, 0.0  ;;  %v2729_v50 = vld [vmem:[%s3430_s13 + $0xd0] sm:$0xff]  }
0x11b0   : > { %v1652_v15 = vmul.f32 1.442695, %v1651_v14 }
0x11b2   : > { %2765 = vpow2.f32 %v1652_v15 }
0x11bc   : > { %v2766_v16 = vpop.eup %2765 }
0x11bd   : > { %1654 = vadd.xlane.f32.xlu1 %v2766_v16 }
0x124a   : > { %v1655_v38 = vpop.xlane.xlu1 %1654 }
0x124b   : > { %2767 = vrcp.f32 %v1655_v38 }
0x1255   : > { %v2768_v44 = vpop.eup %2767 }
0x1256   : > { %v1657_v49 = vmul.f32 %v2768_v44, %v2766_v16 }
0x1258   : > { %2609 = vmatmul.mubr.f32.vlgmr.msra.gmra.mrb[6].mxu1 %v1657_v49  ;;  %v1815_v51 = vmul.f32 %v1811_v8, %v1657_v49  ;;  %v1817_v52 = vmul.f32 %v1813_v48, %v1657_v49  ;;  %v1814_v47 = vmul.f32 %v1810_v46, %v1657_v49  ;;  %v1816_v7 = vmul.f32 %v1812_v5, %v1657_v49 }
0x1259   : > { %2483 = vmatpush3.bf16.msra.mxu1 %v2724_v45 }
0x125a   : > { %2484 = vmatprep.subr.bf16.mxu1 %v2727_v2  ;;  %v1819_v53 = vpack.c.bf16 %v1815_v51, %v1815_v51  ;;  %v1821_v28 = vpack.c.bf16 %v1817_v52, %v1817_v52  ;;  %v1818_v54 = vpack.c.bf16 %v1814_v47, %v1814_v47  ;;  %v1820_v58 = vpack.c.bf16 %v1816_v7, %v1816_v7 }
0x125c   : > { %2196 = vmatprep.mubr.bf16.mxu0 %v1819_v53  ;;  %2236 = vmatprep.mubr.bf16.mxu1 %v1821_v28 }
0x125d   : > { %2485 = vmatpush3.bf16.msra.mxu1 %v2728_v59  ;;  %2197 = vmatmul.mubr.bf16.vlgmr.msra.gmra.mrb[32].mxu0 %v1818_v54 }
0x125e   : > { %2486 = vmatprep.subr.bf16.mxu1 %v2729_v50 }
0x1261   : > { %2487 = vmatpush3.bf16.msra.mxu1 %v2730_v55 }
0x1262   : > { %2488 = vmatprep.subr.bf16.mxu1 %v2731_v56 }
0x1265   : > { %2489 = vmatpush3.bf16.msra.mxu1 %v2732_v57 }
0x1266   : > { %2490 = vmatprep.subr.bf16.mxu1 %v2733_v20 }
0x1269   : > { %2491 = vmatpush3.bf16.msra.mxu1 %v2734_v61 }
0x126a   : > { %2492 = vmatprep.subr.bf16.mxu1 %v2735_v62 }
0x126d   : > { %2493 = vmatpush3.bf16.msra.mxu1 %v2736_v1 }
0x126e   : > { %2494 = vmatprep.subr.bf16.mxu1 %v2737_v27 }
0x1271   : > { %2495 = vmatpush3.bf16.msra.mxu1 %v2738_v4 }
0x1272   : > { %2496 = vmatprep.subr.bf16.mxu1 %v2739_v43 }
0x1275   : > { %2497 = vmatpush3.bf16.msra.mxu1 %v2740_v6 }
0x1278   : > { %2237 = vmatmul.mubr.bf16.vlgmr.msra.gmra.mrb[20].mxu1 %v1820_v58 }
0x132b   : > { %v1968_v10 = vpop.f32.mrb[6].mxu1 }
0x132c   : > { %v2610_v11 = vpop.f32.mrb[7].mxu1 }
0x1330   : > { %v2476_v12 = vpop.f32.mrb[32].mxu0 }
0x1331   : > { %v2477_v13 = vpop.f32.mrb[33].mxu0 }
0x1332   : > { %v2478_v14 = vadd.f32 %v2477_v13, %v2476_v12  ;;  %v2479_v15 = vpop.f32.mrb[34].mxu0 }
0x1333   : > { %v2480_v16 = vpop.f32.mrb[35].mxu0 }
0x1334   : > { %v2199_v0 = vadd.f32 %v2478_v14, %v1968_v10 }
0x134b   : > { %v2498_v17 = vpop.f32.mrb[20].mxu1 }
0x134c   : > { %v2499_v18 = vpop.f32.mrb[21].mxu1 }
0x134d   : > { %v2500_v19 = vadd.f32 %v2499_v18, %v2498_v17  ;;  %v2501_v21 = vpop.f32.mrb[22].mxu1 }
0x134e   : > { %v2502_v22 = vpop.f32.mrb[23].mxu1 }
0x134f   : > { %v2239_v23 = vadd.f32 %v2500_v19, %v2199_v0 }
0x1351   : > { %v2244_v24 = vadd.f32 %v2239_v23, %v3126_v9 }
0x1353   : > { %2245 = vst.msk [vmem:[%s498_s30] sm:$0xff] %vm511_vm0, %v2244_v24 }
0x1354   : > { %2782 = shalt.err (!%p2779_p3)
}
0x1355   : > { %s2783_s17 = scalar_lea.hbm %s3374_s3, 128  ;;  %s2787_s1 = scalar_lea.hbm %s3432_s15, 256 }
0x1356   : > { %p2784_p4 = scmp.ne.s32.totalorder %s3374_s3, %s2783_s17  ;;  %p2788_p9 = scmp.lt.u32.totalorder %s3374_s3, %s3432_s15 }
0x1357   : > { %p2789_p10 = scmp.lt.u32.totalorder %s2787_s1, %s2783_s17  ;;  %p2791_p12 = scmp.lt.u32.totalorder %s2783_s17, %s3374_s3 }
0x1358   : > { %p2785_p7 = pnand %p2784_p4, %p2967_p5 }
0x1359   : > { %p2790_p11 = por %p2789_p10, %p2788_p9 }
0x135a   : > { %p2786_p8 = pneg %p2785_p7 }
0x135b   : > { %p2792_p13 = por %p2791_p12, %p2790_p11 }
0x135d   : > { %p2793_p0 = pnand %p2792_p13, %p2786_p8 }
0x135f   : > { %2796 = shalt.err (!%p2793_p0)
}
0x1360   : > { %2635 = dma.vmem_to_hbm [thread:$0]  (%p2967_p5), %s3376_s0, 128, %s3374_s3, %s2247_s27  }
0x1361 PF: > { %p2641_p1 = scmp.ge.s32.totalorder %s2831_s21, 2  ;;  %s2272_s25 = sand.u32 1, %s2819_s18  }
0x1362   : > { %s2273_s26 = scalar_lea.sflag [#allocation3], %s2272_s25 }
0x1363   : > { %p2638_p2 = pnand %p2641_p1, %p2971_p6 }
0x1365   : > { %2814 = dma.done.wait (!%p2638_p2), %s2273_s26, 128  }
0x1366   : > { %2816 = vsyncadd (!%p2638_p2), %s2273_s26, 4294967168  ;;  %s3446_s16 = sld [smem:[#allocation5_spill]]  ;;  %p25_p3 = scmp.ge.s32.totalorder %s2954_s24, 4  }
0x1367   : > { %s3447_s18 = smov %s2823_s19  ;;  %s3448_s19 = smov %s2827_s20 }
0x1368   : > { %s3450_s21 = smov %s2954_s24  ;;  %27 = sbr.rel (!%p25_p3) target bundleno = 8 (0x8), region = 121 }
0x136c   : > { %s3449_s20 = smov %s3446_s16 }
0x136f   :  { %2278 = vsyncpa [#allocation3], 1 }
0x1370   :  { %2280 = vsyncpa [#allocation3 + $0x1], 1 }

</bundles_post_ra>
